<compile_context>
chip_gen: v5e
topology: v5e:2x2
jax: 0.10.0
libtpu: 0.0.40
codegen_flags: <defaults>
</compile_context>

<pallas_src>
import math

import jax
import jax.numpy as jnp
from jax.experimental import pallas as pl
from jax.experimental.pallas import tpu as pltpu
import numpy as np

# ----------------------------- config -----------------------------
D_MODEL = 32
NUM_LAYERS = 2
D_COND = 4
SEQ_LEN = 8
BATCH = 2
# TODO(synk): nn.LSTM inter-layer dropout is not modeled (dropout=0.0 / eval mode).


# ----------------------------- Pallas kernel -----------------------------
def _lstm_model_kernel(pe_ref, cond_ref, wc_t_ref, bc_ref,
                       w_ih0_t_ref, w_hh0_t_ref, b0_ref,
                       w_rest_t_ref, b_rest_ref,
                       out_ref):
    """Condition projection + PE add + L-layer LSTM, as a layer-time wavefront.

    Shapes (all fully VMEM-resident, single block, no grid):
      pe_ref       (T, D)            cond_ref   (B, Dc)
      wc_t_ref     (Dc, D)           bc_ref     (1, D)
      w_ih0_t_ref  (D, 4D)           w_hh0_t_ref(D, 4D)      b0_ref (1, 4D)  [b_ih0+b_hh0]
      w_rest_t_ref (L-1, 2D, 4D)     fused [W_ih^T ; W_hh^T] for layers >= 1
      b_rest_ref   (L-1, 1, 4D)      combined biases for layers >= 1
      out_ref      (B, T*D)          batch-first slab; wrapper reshapes to (B, T, D)
    """
    B = cond_ref.shape[0]
    T, D = pe_ref.shape
    L = w_rest_t_ref.shape[0] + 1
    f32 = jnp.float32

    # ---- prologue (entirely off the recurrence critical path) ----
    # condition projection: (B, Dc) @ (Dc, D) + b
    cond_proj = (
        jnp.dot(cond_ref[...], wc_t_ref[...], preferred_element_type=f32)
        + bc_ref[...]
    )  # (B, D)

    # Layer-0 input-to-hidden hoist, split into a time part and a batch part:
    #   x0[t, b] = pe[t] + cond_proj[b]  =>  x0 @ W_ih0^T = pe @ W_ih0^T + cond_proj @ W_ih0^T
    g_pe = jnp.dot(pe_ref[...], w_ih0_t_ref[...], preferred_element_type=f32)      # (T, 4D)
    g_base0 = (
        jnp.dot(cond_proj, w_ih0_t_ref[...], preferred_element_type=f32)
        + b0_ref[...]
    )                                                                               # (B, 4D)

    w_hh0_t = w_hh0_t_ref[...]                                   # (D, 4D)
    w_rest = [w_rest_t_ref[l] for l in range(L - 1)]             # each (2D, 4D)
    b_rest = [b_rest_ref[l] for l in range(L - 1)]               # each (1, 4D)

    def cell(gates, c):
        # gates: (B, 4D) in PyTorch gate order [i | f | g | o]
        sig = jax.nn.sigmoid(gates)     # one full 128-lane EUP pass, then slice
        th = jnp.tanh(gates)
        i_g = sig[:, 0 * D:1 * D]
        f_g = sig[:, 1 * D:2 * D]
        g_g = th[:, 2 * D:3 * D]
        o_g = sig[:, 3 * D:4 * D]
        c_new = f_g * c + i_g * g_g
        h_new = o_g * jnp.tanh(c_new)
        return h_new, c_new

    # ---- layer-time wavefront (statically unrolled: T + L - 1 = 9 steps) ----
    h = [jnp.zeros((B, D), f32) for _ in range(L)]
    c = [jnp.zeros((B, D), f32) for _ in range(L)]
    outs = []

    for s in range(T + L - 1):
        h_prev = list(h)                 # snapshot: all layers' states from step s-1
        for l in range(L):
            t = s - l
            if not (0 <= t < T):
                continue
            if l == 0:
                # only h0 @ W_hh0^T is on the serial path; the rest is precomputed
                gates = (g_pe[t:t + 1, :] + g_base0
                         + jnp.dot(h_prev[0], w_hh0_t, preferred_element_type=f32))
            else:
                # fused input+recurrent matmul: [h_{l-1}(t) | h_l(t-1)] @ [W_ih^T ; W_hh^T]
                lhs = jnp.concatenate([h_prev[l - 1], h_prev[l]], axis=-1)   # (B, 2D)
                gates = (jnp.dot(lhs, w_rest[l - 1], preferred_element_type=f32)
                         + b_rest[l - 1])
            h[l], c[l] = cell(gates, c[l])
            if l == L - 1:
                outs.append(h[l])

    # single lane-dense (B, T*D) store; batch-first, no transpose anywhere
    out_ref[...] = jnp.concatenate(outs, axis=-1)


# ----------------------------- wrapper -----------------------------
def prepare_params(wc, bc, wih, whh, bih, bhh):
    """One-time layout prep (keep off the per-call path): transposes, bias combine,
    and per-layer W_ih/W_hh fusion for layers >= 1."""
    L = wih.shape[0]
    D = wih.shape[-1]
    wc_t = wc.T                                    # (Dc, D)
    bc2 = bc.reshape(1, D)                         # (1, D)
    b = bih + bhh                                  # (L, 4D) combined biases
    w_ih0_t = wih[0].T                             # (D, 4D)
    w_hh0_t = whh[0].T                             # (D, 4D)
    b0 = b[0].reshape(1, 4 * D)                    # (1, 4D)
    w_rest_t = jnp.stack(
        [jnp.concatenate([wih[l].T, whh[l].T], axis=0) for l in range(1, L)]
    )                                              # (L-1, 2D, 4D)
    b_rest = b[1:][:, None, :]                     # (L-1, 1, 4D)
    return (wc_t, bc2, w_ih0_t, w_hh0_t, b0, w_rest_t, b_rest)


def lstm_model_forward(pe, cond, prepped):
    wc_t, bc2, w_ih0_t, w_hh0_t, b0, w_rest_t, b_rest = prepped
    B = cond.shape[0]
    T, D = pe.shape

    vmem = pl.BlockSpec(memory_space=pltpu.MemorySpace.VMEM)
    out_flat = pl.pallas_call(
        _lstm_model_kernel,
        out_shape=jax.ShapeDtypeStruct((B, T * D), jnp.float32),
        in_specs=[vmem] * 9,
        out_specs=vmem,
    )(pe, cond, wc_t, bc2, w_ih0_t, w_hh0_t, b0, w_rest_t, b_rest)
    # Single block, no grid: at B=2/T=8 cross-TensorCore sharding would only add sync.
    return out_flat.reshape(B, T, D)


# ----------------------------- parameter / input setup -----------------------------
def get_sinusoid(max_len, d_model):
    position = jnp.arange(max_len, dtype=jnp.float32)[:, None]               # (T, 1)
    div_term = jnp.exp(jnp.arange(0, d_model, 2, dtype=jnp.float32)
                       * (-math.log(10000.0) / d_model))                     # (D/2,)
    sin = jnp.sin(position * div_term)                                       # (T, D/2)
    cos = jnp.cos(position * div_term)                                       # (T, D/2)
    # interleave: pe[:, 0::2] = sin, pe[:, 1::2] = cos
    return jnp.stack([sin, cos], axis=-1).reshape(max_len, d_model)


def init_params(key):
    D, L, Dc = D_MODEL, NUM_LAYERS, D_COND
    ks = jax.random.split(key, 2 + 4 * L)
    bound_lstm = 1.0 / math.sqrt(D)
    bound_lin = 1.0 / math.sqrt(Dc)
    wc = jax.random.uniform(ks[0], (D, Dc), jnp.float32, -bound_lin, bound_lin)
    bc = jax.random.uniform(ks[1], (1, D), jnp.float32, -bound_lin, bound_lin)
    wih = jnp.stack([jax.random.uniform(ks[2 + 4 * l + 0], (4 * D, D), jnp.float32,
                                        -bound_lstm, bound_lstm) for l in range(L)])
    whh = jnp.stack([jax.random.uniform(ks[2 + 4 * l + 1], (4 * D, D), jnp.float32,
                                        -bound_lstm, bound_lstm) for l in range(L)])
    bih = jnp.stack([jax.random.uniform(ks[2 + 4 * l + 2], (4 * D,), jnp.float32,
                                        -bound_lstm, bound_lstm) for l in range(L)])
    bhh = jnp.stack([jax.random.uniform(ks[2 + 4 * l + 3], (4 * D,), jnp.float32,
                                        -bound_lstm, bound_lstm) for l in range(L)])
    return wc, bc, wih, whh, bih, bhh


# ----------------------------- pure-JAX reference -----------------------------
def ref_forward(pe, cond, wc, bc, wih, whh, bih, bhh):
    B = cond.shape[0]
    T, D = pe.shape
    cproj = cond @ wc.T + bc                                  # (B, D)
    x = pe[None, :, :] + cproj[:, None, :]                    # (B, T, D)
    for l in range(wih.shape[0]):
        h = jnp.zeros((B, D), jnp.float32)
        c = jnp.zeros((B, D), jnp.float32)
        outs = []
        for t in range(T):
            g = x[:, t] @ wih[l].T + h @ whh[l].T + bih[l] + bhh[l]
            i_g = jax.nn.sigmoid(g[:, 0 * D:1 * D])
            f_g = jax.nn.sigmoid(g[:, 1 * D:2 * D])
            g_g = jnp.tanh(g[:, 2 * D:3 * D])
            o_g = jax.nn.sigmoid(g[:, 3 * D:4 * D])
            c = f_g * c + i_g * g_g
            h = o_g * jnp.tanh(c)
            outs.append(h)
        x = jnp.stack(outs, axis=1)
    return x


# ----------------------------- main -----------------------------
if __name__ == "__main__":
    key = jax.random.PRNGKey(0)
    k_param, k_cond = jax.random.split(key)

    pe = get_sinusoid(SEQ_LEN, D_MODEL)                                  # (T, D)
    wc, bc, wih, whh, bih, bhh = init_params(k_param)
    condition = jax.random.normal(k_cond, (BATCH, D_COND), jnp.float32)  # (B, Dc)

    # one-time layout prep (outside the per-call path)
    prepped = prepare_params(wc, bc, wih, whh, bih, bhh)
    prepped = jax.tree_util.tree_map(jax.block_until_ready, prepped)

    out = lstm_model_forward(pe, condition, prepped)
    out = jax.block_until_ready(out)

    ref = jax.block_until_ready(ref_forward(pe, condition, wc, bc, wih, whh, bih, bhh))
    assert out.shape == (BATCH, SEQ_LEN, D_MODEL), out.shape
    np.testing.assert_allclose(np.asarray(out), np.asarray(ref), rtol=1e-4, atol=1e-5)

    print("KERNEL_OK")
</pallas_src>

<mosaic_0001>
module attributes {stable_mosaic.version = 11 : i64} {
  func.func @_lstm_model_kernel(%arg0: memref<8x32xf32, #tpu.memory_space<vmem>>, %arg1: memref<2x4xf32, #tpu.memory_space<vmem>>, %arg2: memref<4x32xf32, #tpu.memory_space<vmem>>, %arg3: memref<1x32xf32, #tpu.memory_space<vmem>>, %arg4: memref<32x128xf32, #tpu.memory_space<vmem>>, %arg5: memref<32x128xf32, #tpu.memory_space<vmem>>, %arg6: memref<1x128xf32, #tpu.memory_space<vmem>>, %arg7: memref<1x64x128xf32, #tpu.memory_space<vmem>>, %arg8: memref<1x1x128xf32, #tpu.memory_space<vmem>>, %arg9: memref<2x256xf32, #tpu.memory_space<vmem>>) attributes {dimension_semantics = [], scalar_prefetch = 0 : i64, scratch_operands = 0 : i64, tpu.core_type = #tpu.core_type<tc>} {
    %c0 = arith.constant 0 : index
    %c0_0 = arith.constant 0 : index
    %0 = vector.load %arg1[%c0, %c0_0] : memref<2x4xf32, #tpu.memory_space<vmem>>, vector<2x4xf32>
    %c0_1 = arith.constant 0 : index
    %c0_2 = arith.constant 0 : index
    %1 = vector.load %arg2[%c0_1, %c0_2] : memref<4x32xf32, #tpu.memory_space<vmem>>, vector<4x32xf32>
    %cst = arith.constant dense<0.000000e+00> : vector<2x32xf32>
    %2 = tpu.matmul %0, %1, %cst {dimension_numbers = #tpu.dot_dimension_numbers<[1], [0], [0], [1], [0, 0, 1, 1], [], []>} : vector<2x4xf32>, vector<4x32xf32>, vector<2x32xf32> -> vector<2x32xf32>
    %c0_3 = arith.constant 0 : index
    %c0_4 = arith.constant 0 : index
    %3 = vector.load %arg3[%c0_3, %c0_4] : memref<1x32xf32, #tpu.memory_space<vmem>>, vector<1x32xf32>
    %4 = vector.broadcast %3 : vector<1x32xf32> to vector<2x32xf32>
    %5 = arith.addf %2, %4 : vector<2x32xf32>
    %c0_5 = arith.constant 0 : index
    %c0_6 = arith.constant 0 : index
    %6 = vector.load %arg0[%c0_5, %c0_6] : memref<8x32xf32, #tpu.memory_space<vmem>>, vector<8x32xf32>
    %c0_7 = arith.constant 0 : index
    %c0_8 = arith.constant 0 : index
    %7 = vector.load %arg4[%c0_7, %c0_8] : memref<32x128xf32, #tpu.memory_space<vmem>>, vector<32x128xf32>
    %cst_9 = arith.constant dense<0.000000e+00> : vector<8x128xf32>
    %8 = tpu.matmul %6, %7, %cst_9 {dimension_numbers = #tpu.dot_dimension_numbers<[1], [0], [0], [1], [0, 0, 1, 1], [], []>} : vector<8x32xf32>, vector<32x128xf32>, vector<8x128xf32> -> vector<8x128xf32>
    %c0_10 = arith.constant 0 : index
    %c0_11 = arith.constant 0 : index
    %9 = vector.load %arg4[%c0_10, %c0_11] : memref<32x128xf32, #tpu.memory_space<vmem>>, vector<32x128xf32>
    %cst_12 = arith.constant dense<0.000000e+00> : vector<2x128xf32>
    %10 = tpu.matmul %5, %9, %cst_12 {dimension_numbers = #tpu.dot_dimension_numbers<[1], [0], [0], [1], [0, 0, 1, 1], [], []>} : vector<2x32xf32>, vector<32x128xf32>, vector<2x128xf32> -> vector<2x128xf32>
    %c0_13 = arith.constant 0 : index
    %c0_14 = arith.constant 0 : index
    %11 = vector.load %arg6[%c0_13, %c0_14] : memref<1x128xf32, #tpu.memory_space<vmem>>, vector<1x128xf32>
    %12 = vector.broadcast %11 : vector<1x128xf32> to vector<2x128xf32>
    %13 = arith.addf %10, %12 : vector<2x128xf32>
    %c0_15 = arith.constant 0 : index
    %c0_16 = arith.constant 0 : index
    %14 = vector.load %arg5[%c0_15, %c0_16] : memref<32x128xf32, #tpu.memory_space<vmem>>, vector<32x128xf32>
    %c0_17 = arith.constant 0 : index
    %c0_18 = arith.constant 0 : index
    %c0_19 = arith.constant 0 : index
    %15 = vector.load %arg7[%c0_17, %c0_18, %c0_19] : memref<1x64x128xf32, #tpu.memory_space<vmem>>, vector<1x64x128xf32>
    %16 = vector.shape_cast %15 : vector<1x64x128xf32> to vector<64x128xf32>
    %c0_20 = arith.constant 0 : index
    %c0_21 = arith.constant 0 : index
    %c0_22 = arith.constant 0 : index
    %17 = vector.load %arg8[%c0_20, %c0_21, %c0_22] : memref<1x1x128xf32, #tpu.memory_space<vmem>>, vector<1x1x128xf32>
    %18 = vector.shape_cast %17 : vector<1x1x128xf32> to vector<1x128xf32>
    %cst_23 = arith.constant 0.000000e+00 : f32
    %19 = vector.broadcast %cst_23 : f32 to vector<2x32xf32>
    %cst_24 = arith.constant 0.000000e+00 : f32
    %20 = vector.broadcast %cst_24 : f32 to vector<2x32xf32>
    %cst_25 = arith.constant 0.000000e+00 : f32
    %21 = vector.broadcast %cst_25 : f32 to vector<2x32xf32>
    %cst_26 = arith.constant 0.000000e+00 : f32
    %22 = vector.broadcast %cst_26 : f32 to vector<2x32xf32>
    %23 = vector.extract_strided_slice %8 {offsets = [0, 0], sizes = [1, 128], strides = [1, 1]} : vector<8x128xf32> to vector<1x128xf32>
    %24 = vector.broadcast %23 : vector<1x128xf32> to vector<2x128xf32>
    %25 = arith.addf %24, %13 : vector<2x128xf32>
    %cst_27 = arith.constant dense<0.000000e+00> : vector<2x128xf32>
    %26 = tpu.matmul %19, %14, %cst_27 {dimension_numbers = #tpu.dot_dimension_numbers<[1], [0], [0], [1], [0, 0, 1, 1], [], []>} : vector<2x32xf32>, vector<32x128xf32>, vector<2x128xf32> -> vector<2x128xf32>
    %27 = arith.addf %25, %26 : vector<2x128xf32>
    %28 = arith.negf %27 : vector<2x128xf32>
    %29 = math.exp %28 : vector<2x128xf32>
    %cst_28 = arith.constant 1.000000e+00 : f32
    %30 = vector.broadcast %cst_28 : f32 to vector<2x128xf32>
    %31 = arith.addf %30, %29 : vector<2x128xf32>
    %32 = arith.divf %30, %31 : vector<2x128xf32>
    %33 = math.tanh %27 : vector<2x128xf32>
    %34 = vector.extract_strided_slice %32 {offsets = [0, 0], sizes = [2, 32], strides = [1, 1]} : vector<2x128xf32> to vector<2x32xf32>
    %35 = vector.extract_strided_slice %32 {offsets = [0, 32], sizes = [2, 32], strides = [1, 1]} : vector<2x128xf32> to vector<2x32xf32>
    %36 = vector.extract_strided_slice %33 {offsets = [0, 64], sizes = [2, 32], strides = [1, 1]} : vector<2x128xf32> to vector<2x32xf32>
    %37 = vector.extract_strided_slice %32 {offsets = [0, 96], sizes = [2, 32], strides = [1, 1]} : vector<2x128xf32> to vector<2x32xf32>
    %38 = arith.mulf %35, %21 : vector<2x32xf32>
    %39 = arith.mulf %34, %36 : vector<2x32xf32>
    %40 = arith.addf %38, %39 : vector<2x32xf32>
    %41 = math.tanh %40 : vector<2x32xf32>
    %42 = arith.mulf %37, %41 : vector<2x32xf32>
    %43 = vector.extract_strided_slice %8 {offsets = [1, 0], sizes = [1, 128], strides = [1, 1]} : vector<8x128xf32> to vector<1x128xf32>
    %44 = vector.broadcast %43 : vector<1x128xf32> to vector<2x128xf32>
    %45 = arith.addf %44, %13 : vector<2x128xf32>
    %cst_29 = arith.constant dense<0.000000e+00> : vector<2x128xf32>
    %46 = tpu.matmul %42, %14, %cst_29 {dimension_numbers = #tpu.dot_dimension_numbers<[1], [0], [0], [1], [0, 0, 1, 1], [], []>} : vector<2x32xf32>, vector<32x128xf32>, vector<2x128xf32> -> vector<2x128xf32>
    %47 = arith.addf %45, %46 : vector<2x128xf32>
    %48 = arith.negf %47 : vector<2x128xf32>
    %49 = math.exp %48 : vector<2x128xf32>
    %cst_30 = arith.constant 1.000000e+00 : f32
    %50 = vector.broadcast %cst_30 : f32 to vector<2x128xf32>
    %51 = arith.addf %50, %49 : vector<2x128xf32>
    %52 = arith.divf %50, %51 : vector<2x128xf32>
    %53 = math.tanh %47 : vector<2x128xf32>
    %54 = vector.extract_strided_slice %52 {offsets = [0, 0], sizes = [2, 32], strides = [1, 1]} : vector<2x128xf32> to vector<2x32xf32>
    %55 = vector.extract_strided_slice %52 {offsets = [0, 32], sizes = [2, 32], strides = [1, 1]} : vector<2x128xf32> to vector<2x32xf32>
    %56 = vector.extract_strided_slice %53 {offsets = [0, 64], sizes = [2, 32], strides = [1, 1]} : vector<2x128xf32> to vector<2x32xf32>
    %57 = vector.extract_strided_slice %52 {offsets = [0, 96], sizes = [2, 32], strides = [1, 1]} : vector<2x128xf32> to vector<2x32xf32>
    %58 = arith.mulf %55, %40 : vector<2x32xf32>
    %59 = arith.mulf %54, %56 : vector<2x32xf32>
    %60 = arith.addf %58, %59 : vector<2x32xf32>
    %61 = math.tanh %60 : vector<2x32xf32>
    %62 = arith.mulf %57, %61 : vector<2x32xf32>
    %63 = tpu.concatenate %42, %20 in 1 : vector<2x32xf32>, vector<2x32xf32> -> vector<2x64xf32>
    %cst_31 = arith.constant dense<0.000000e+00> : vector<2x128xf32>
    %64 = tpu.matmul %63, %16, %cst_31 {dimension_numbers = #tpu.dot_dimension_numbers<[1], [0], [0], [1], [0, 0, 1, 1], [], []>} : vector<2x64xf32>, vector<64x128xf32>, vector<2x128xf32> -> vector<2x128xf32>
    %65 = vector.broadcast %18 : vector<1x128xf32> to vector<2x128xf32>
    %66 = arith.addf %64, %65 : vector<2x128xf32>
    %67 = arith.negf %66 : vector<2x128xf32>
    %68 = math.exp %67 : vector<2x128xf32>
    %cst_32 = arith.constant 1.000000e+00 : f32
    %69 = vector.broadcast %cst_32 : f32 to vector<2x128xf32>
    %70 = arith.addf %69, %68 : vector<2x128xf32>
    %71 = arith.divf %69, %70 : vector<2x128xf32>
    %72 = math.tanh %66 : vector<2x128xf32>
    %73 = vector.extract_strided_slice %71 {offsets = [0, 0], sizes = [2, 32], strides = [1, 1]} : vector<2x128xf32> to vector<2x32xf32>
    %74 = vector.extract_strided_slice %71 {offsets = [0, 32], sizes = [2, 32], strides = [1, 1]} : vector<2x128xf32> to vector<2x32xf32>
    %75 = vector.extract_strided_slice %72 {offsets = [0, 64], sizes = [2, 32], strides = [1, 1]} : vector<2x128xf32> to vector<2x32xf32>
    %76 = vector.extract_strided_slice %71 {offsets = [0, 96], sizes = [2, 32], strides = [1, 1]} : vector<2x128xf32> to vector<2x32xf32>
    %77 = arith.mulf %74, %22 : vector<2x32xf32>
    %78 = arith.mulf %73, %75 : vector<2x32xf32>
    %79 = arith.addf %77, %78 : vector<2x32xf32>
    %80 = math.tanh %79 : vector<2x32xf32>
    %81 = arith.mulf %76, %80 : vector<2x32xf32>
    %82 = vector.extract_strided_slice %8 {offsets = [2, 0], sizes = [1, 128], strides = [1, 1]} : vector<8x128xf32> to vector<1x128xf32>
    %83 = vector.broadcast %82 : vector<1x128xf32> to vector<2x128xf32>
    %84 = arith.addf %83, %13 : vector<2x128xf32>
    %cst_33 = arith.constant dense<0.000000e+00> : vector<2x128xf32>
    %85 = tpu.matmul %62, %14, %cst_33 {dimension_numbers = #tpu.dot_dimension_numbers<[1], [0], [0], [1], [0, 0, 1, 1], [], []>} : vector<2x32xf32>, vector<32x128xf32>, vector<2x128xf32> -> vector<2x128xf32>
    %86 = arith.addf %84, %85 : vector<2x128xf32>
    %87 = arith.negf %86 : vector<2x128xf32>
    %88 = math.exp %87 : vector<2x128xf32>
    %cst_34 = arith.constant 1.000000e+00 : f32
    %89 = vector.broadcast %cst_34 : f32 to vector<2x128xf32>
    %90 = arith.addf %89, %88 : vector<2x128xf32>
    %91 = arith.divf %89, %90 : vector<2x128xf32>
    %92 = math.tanh %86 : vector<2x128xf32>
    %93 = vector.extract_strided_slice %91 {offsets = [0, 0], sizes = [2, 32], strides = [1, 1]} : vector<2x128xf32> to vector<2x32xf32>
    %94 = vector.extract_strided_slice %91 {offsets = [0, 32], sizes = [2, 32], strides = [1, 1]} : vector<2x128xf32> to vector<2x32xf32>
    %95 = vector.extract_strided_slice %92 {offsets = [0, 64], sizes = [2, 32], strides = [1, 1]} : vector<2x128xf32> to vector<2x32xf32>
    %96 = vector.extract_strided_slice %91 {offsets = [0, 96], sizes = [2, 32], strides = [1, 1]} : vector<2x128xf32> to vector<2x32xf32>
    %97 = arith.mulf %94, %60 : vector<2x32xf32>
    %98 = arith.mulf %93, %95 : vector<2x32xf32>
    %99 = arith.addf %97, %98 : vector<2x32xf32>
    %100 = math.tanh %99 : vector<2x32xf32>
    %101 = arith.mulf %96, %100 : vector<2x32xf32>
    %102 = tpu.concatenate %62, %81 in 1 : vector<2x32xf32>, vector<2x32xf32> -> vector<2x64xf32>
    %cst_35 = arith.constant dense<0.000000e+00> : vector<2x128xf32>
    %103 = tpu.matmul %102, %16, %cst_35 {dimension_numbers = #tpu.dot_dimension_numbers<[1], [0], [0], [1], [0, 0, 1, 1], [], []>} : vector<2x64xf32>, vector<64x128xf32>, vector<2x128xf32> -> vector<2x128xf32>
    %104 = vector.broadcast %18 : vector<1x128xf32> to vector<2x128xf32>
    %105 = arith.addf %103, %104 : vector<2x128xf32>
    %106 = arith.negf %105 : vector<2x128xf32>
    %107 = math.exp %106 : vector<2x128xf32>
    %cst_36 = arith.constant 1.000000e+00 : f32
    %108 = vector.broadcast %cst_36 : f32 to vector<2x128xf32>
    %109 = arith.addf %108, %107 : vector<2x128xf32>
    %110 = arith.divf %108, %109 : vector<2x128xf32>
    %111 = math.tanh %105 : vector<2x128xf32>
    %112 = vector.extract_strided_slice %110 {offsets = [0, 0], sizes = [2, 32], strides = [1, 1]} : vector<2x128xf32> to vector<2x32xf32>
    %113 = vector.extract_strided_slice %110 {offsets = [0, 32], sizes = [2, 32], strides = [1, 1]} : vector<2x128xf32> to vector<2x32xf32>
    %114 = vector.extract_strided_slice %111 {offsets = [0, 64], sizes = [2, 32], strides = [1, 1]} : vector<2x128xf32> to vector<2x32xf32>
    %115 = vector.extract_strided_slice %110 {offsets = [0, 96], sizes = [2, 32], strides = [1, 1]} : vector<2x128xf32> to vector<2x32xf32>
    %116 = arith.mulf %113, %79 : vector<2x32xf32>
    %117 = arith.mulf %112, %114 : vector<2x32xf32>
    %118 = arith.addf %116, %117 : vector<2x32xf32>
    %119 = math.tanh %118 : vector<2x32xf32>
    %120 = arith.mulf %115, %119 : vector<2x32xf32>
    %121 = vector.extract_strided_slice %8 {offsets = [3, 0], sizes = [1, 128], strides = [1, 1]} : vector<8x128xf32> to vector<1x128xf32>
    %122 = vector.broadcast %121 : vector<1x128xf32> to vector<2x128xf32>
    %123 = arith.addf %122, %13 : vector<2x128xf32>
    %cst_37 = arith.constant dense<0.000000e+00> : vector<2x128xf32>
    %124 = tpu.matmul %101, %14, %cst_37 {dimension_numbers = #tpu.dot_dimension_numbers<[1], [0], [0], [1], [0, 0, 1, 1], [], []>} : vector<2x32xf32>, vector<32x128xf32>, vector<2x128xf32> -> vector<2x128xf32>
    %125 = arith.addf %123, %124 : vector<2x128xf32>
    %126 = arith.negf %125 : vector<2x128xf32>
    %127 = math.exp %126 : vector<2x128xf32>
    %cst_38 = arith.constant 1.000000e+00 : f32
    %128 = vector.broadcast %cst_38 : f32 to vector<2x128xf32>
    %129 = arith.addf %128, %127 : vector<2x128xf32>
    %130 = arith.divf %128, %129 : vector<2x128xf32>
    %131 = math.tanh %125 : vector<2x128xf32>
    %132 = vector.extract_strided_slice %130 {offsets = [0, 0], sizes = [2, 32], strides = [1, 1]} : vector<2x128xf32> to vector<2x32xf32>
    %133 = vector.extract_strided_slice %130 {offsets = [0, 32], sizes = [2, 32], strides = [1, 1]} : vector<2x128xf32> to vector<2x32xf32>
    %134 = vector.extract_strided_slice %131 {offsets = [0, 64], sizes = [2, 32], strides = [1, 1]} : vector<2x128xf32> to vector<2x32xf32>
    %135 = vector.extract_strided_slice %130 {offsets = [0, 96], sizes = [2, 32], strides = [1, 1]} : vector<2x128xf32> to vector<2x32xf32>
    %136 = arith.mulf %133, %99 : vector<2x32xf32>
    %137 = arith.mulf %132, %134 : vector<2x32xf32>
    %138 = arith.addf %136, %137 : vector<2x32xf32>
    %139 = math.tanh %138 : vector<2x32xf32>
    %140 = arith.mulf %135, %139 : vector<2x32xf32>
    %141 = tpu.concatenate %101, %120 in 1 : vector<2x32xf32>, vector<2x32xf32> -> vector<2x64xf32>
    %cst_39 = arith.constant dense<0.000000e+00> : vector<2x128xf32>
    %142 = tpu.matmul %141, %16, %cst_39 {dimension_numbers = #tpu.dot_dimension_numbers<[1], [0], [0], [1], [0, 0, 1, 1], [], []>} : vector<2x64xf32>, vector<64x128xf32>, vector<2x128xf32> -> vector<2x128xf32>
    %143 = vector.broadcast %18 : vector<1x128xf32> to vector<2x128xf32>
    %144 = arith.addf %142, %143 : vector<2x128xf32>
    %145 = arith.negf %144 : vector<2x128xf32>
    %146 = math.exp %145 : vector<2x128xf32>
    %cst_40 = arith.constant 1.000000e+00 : f32
    %147 = vector.broadcast %cst_40 : f32 to vector<2x128xf32>
    %148 = arith.addf %147, %146 : vector<2x128xf32>
    %149 = arith.divf %147, %148 : vector<2x128xf32>
    %150 = math.tanh %144 : vector<2x128xf32>
    %151 = vector.extract_strided_slice %149 {offsets = [0, 0], sizes = [2, 32], strides = [1, 1]} : vector<2x128xf32> to vector<2x32xf32>
    %152 = vector.extract_strided_slice %149 {offsets = [0, 32], sizes = [2, 32], strides = [1, 1]} : vector<2x128xf32> to vector<2x32xf32>
    %153 = vector.extract_strided_slice %150 {offsets = [0, 64], sizes = [2, 32], strides = [1, 1]} : vector<2x128xf32> to vector<2x32xf32>
    %154 = vector.extract_strided_slice %149 {offsets = [0, 96], sizes = [2, 32], strides = [1, 1]} : vector<2x128xf32> to vector<2x32xf32>
    %155 = arith.mulf %152, %118 : vector<2x32xf32>
    %156 = arith.mulf %151, %153 : vector<2x32xf32>
    %157 = arith.addf %155, %156 : vector<2x32xf32>
    %158 = math.tanh %157 : vector<2x32xf32>
    %159 = arith.mulf %154, %158 : vector<2x32xf32>
    %160 = vector.extract_strided_slice %8 {offsets = [4, 0], sizes = [1, 128], strides = [1, 1]} : vector<8x128xf32> to vector<1x128xf32>
    %161 = vector.broadcast %160 : vector<1x128xf32> to vector<2x128xf32>
    %162 = arith.addf %161, %13 : vector<2x128xf32>
    %cst_41 = arith.constant dense<0.000000e+00> : vector<2x128xf32>
    %163 = tpu.matmul %140, %14, %cst_41 {dimension_numbers = #tpu.dot_dimension_numbers<[1], [0], [0], [1], [0, 0, 1, 1], [], []>} : vector<2x32xf32>, vector<32x128xf32>, vector<2x128xf32> -> vector<2x128xf32>
    %164 = arith.addf %162, %163 : vector<2x128xf32>
    %165 = arith.negf %164 : vector<2x128xf32>
    %166 = math.exp %165 : vector<2x128xf32>
    %cst_42 = arith.constant 1.000000e+00 : f32
    %167 = vector.broadcast %cst_42 : f32 to vector<2x128xf32>
    %168 = arith.addf %167, %166 : vector<2x128xf32>
    %169 = arith.divf %167, %168 : vector<2x128xf32>
    %170 = math.tanh %164 : vector<2x128xf32>
    %171 = vector.extract_strided_slice %169 {offsets = [0, 0], sizes = [2, 32], strides = [1, 1]} : vector<2x128xf32> to vector<2x32xf32>
    %172 = vector.extract_strided_slice %169 {offsets = [0, 32], sizes = [2, 32], strides = [1, 1]} : vector<2x128xf32> to vector<2x32xf32>
    %173 = vector.extract_strided_slice %170 {offsets = [0, 64], sizes = [2, 32], strides = [1, 1]} : vector<2x128xf32> to vector<2x32xf32>
    %174 = vector.extract_strided_slice %169 {offsets = [0, 96], sizes = [2, 32], strides = [1, 1]} : vector<2x128xf32> to vector<2x32xf32>
    %175 = arith.mulf %172, %138 : vector<2x32xf32>
    %176 = arith.mulf %171, %173 : vector<2x32xf32>
    %177 = arith.addf %175, %176 : vector<2x32xf32>
    %178 = math.tanh %177 : vector<2x32xf32>
    %179 = arith.mulf %174, %178 : vector<2x32xf32>
    %180 = tpu.concatenate %140, %159 in 1 : vector<2x32xf32>, vector<2x32xf32> -> vector<2x64xf32>
    %cst_43 = arith.constant dense<0.000000e+00> : vector<2x128xf32>
    %181 = tpu.matmul %180, %16, %cst_43 {dimension_numbers = #tpu.dot_dimension_numbers<[1], [0], [0], [1], [0, 0, 1, 1], [], []>} : vector<2x64xf32>, vector<64x128xf32>, vector<2x128xf32> -> vector<2x128xf32>
    %182 = vector.broadcast %18 : vector<1x128xf32> to vector<2x128xf32>
    %183 = arith.addf %181, %182 : vector<2x128xf32>
    %184 = arith.negf %183 : vector<2x128xf32>
    %185 = math.exp %184 : vector<2x128xf32>
    %cst_44 = arith.constant 1.000000e+00 : f32
    %186 = vector.broadcast %cst_44 : f32 to vector<2x128xf32>
    %187 = arith.addf %186, %185 : vector<2x128xf32>
    %188 = arith.divf %186, %187 : vector<2x128xf32>
    %189 = math.tanh %183 : vector<2x128xf32>
    %190 = vector.extract_strided_slice %188 {offsets = [0, 0], sizes = [2, 32], strides = [1, 1]} : vector<2x128xf32> to vector<2x32xf32>
    %191 = vector.extract_strided_slice %188 {offsets = [0, 32], sizes = [2, 32], strides = [1, 1]} : vector<2x128xf32> to vector<2x32xf32>
    %192 = vector.extract_strided_slice %189 {offsets = [0, 64], sizes = [2, 32], strides = [1, 1]} : vector<2x128xf32> to vector<2x32xf32>
    %193 = vector.extract_strided_slice %188 {offsets = [0, 96], sizes = [2, 32], strides = [1, 1]} : vector<2x128xf32> to vector<2x32xf32>
    %194 = arith.mulf %191, %157 : vector<2x32xf32>
    %195 = arith.mulf %190, %192 : vector<2x32xf32>
    %196 = arith.addf %194, %195 : vector<2x32xf32>
    %197 = math.tanh %196 : vector<2x32xf32>
    %198 = arith.mulf %193, %197 : vector<2x32xf32>
    %199 = vector.extract_strided_slice %8 {offsets = [5, 0], sizes = [1, 128], strides = [1, 1]} : vector<8x128xf32> to vector<1x128xf32>
    %200 = vector.broadcast %199 : vector<1x128xf32> to vector<2x128xf32>
    %201 = arith.addf %200, %13 : vector<2x128xf32>
    %cst_45 = arith.constant dense<0.000000e+00> : vector<2x128xf32>
    %202 = tpu.matmul %179, %14, %cst_45 {dimension_numbers = #tpu.dot_dimension_numbers<[1], [0], [0], [1], [0, 0, 1, 1], [], []>} : vector<2x32xf32>, vector<32x128xf32>, vector<2x128xf32> -> vector<2x128xf32>
    %203 = arith.addf %201, %202 : vector<2x128xf32>
    %204 = arith.negf %203 : vector<2x128xf32>
    %205 = math.exp %204 : vector<2x128xf32>
    %cst_46 = arith.constant 1.000000e+00 : f32
    %206 = vector.broadcast %cst_46 : f32 to vector<2x128xf32>
    %207 = arith.addf %206, %205 : vector<2x128xf32>
    %208 = arith.divf %206, %207 : vector<2x128xf32>
    %209 = math.tanh %203 : vector<2x128xf32>
    %210 = vector.extract_strided_slice %208 {offsets = [0, 0], sizes = [2, 32], strides = [1, 1]} : vector<2x128xf32> to vector<2x32xf32>
    %211 = vector.extract_strided_slice %208 {offsets = [0, 32], sizes = [2, 32], strides = [1, 1]} : vector<2x128xf32> to vector<2x32xf32>
    %212 = vector.extract_strided_slice %209 {offsets = [0, 64], sizes = [2, 32], strides = [1, 1]} : vector<2x128xf32> to vector<2x32xf32>
    %213 = vector.extract_strided_slice %208 {offsets = [0, 96], sizes = [2, 32], strides = [1, 1]} : vector<2x128xf32> to vector<2x32xf32>
    %214 = arith.mulf %211, %177 : vector<2x32xf32>
    %215 = arith.mulf %210, %212 : vector<2x32xf32>
    %216 = arith.addf %214, %215 : vector<2x32xf32>
    %217 = math.tanh %216 : vector<2x32xf32>
    %218 = arith.mulf %213, %217 : vector<2x32xf32>
    %219 = tpu.concatenate %179, %198 in 1 : vector<2x32xf32>, vector<2x32xf32> -> vector<2x64xf32>
    %cst_47 = arith.constant dense<0.000000e+00> : vector<2x128xf32>
    %220 = tpu.matmul %219, %16, %cst_47 {dimension_numbers = #tpu.dot_dimension_numbers<[1], [0], [0], [1], [0, 0, 1, 1], [], []>} : vector<2x64xf32>, vector<64x128xf32>, vector<2x128xf32> -> vector<2x128xf32>
    %221 = vector.broadcast %18 : vector<1x128xf32> to vector<2x128xf32>
    %222 = arith.addf %220, %221 : vector<2x128xf32>
    %223 = arith.negf %222 : vector<2x128xf32>
    %224 = math.exp %223 : vector<2x128xf32>
    %cst_48 = arith.constant 1.000000e+00 : f32
    %225 = vector.broadcast %cst_48 : f32 to vector<2x128xf32>
    %226 = arith.addf %225, %224 : vector<2x128xf32>
    %227 = arith.divf %225, %226 : vector<2x128xf32>
    %228 = math.tanh %222 : vector<2x128xf32>
    %229 = vector.extract_strided_slice %227 {offsets = [0, 0], sizes = [2, 32], strides = [1, 1]} : vector<2x128xf32> to vector<2x32xf32>
    %230 = vector.extract_strided_slice %227 {offsets = [0, 32], sizes = [2, 32], strides = [1, 1]} : vector<2x128xf32> to vector<2x32xf32>
    %231 = vector.extract_strided_slice %228 {offsets = [0, 64], sizes = [2, 32], strides = [1, 1]} : vector<2x128xf32> to vector<2x32xf32>
    %232 = vector.extract_strided_slice %227 {offsets = [0, 96], sizes = [2, 32], strides = [1, 1]} : vector<2x128xf32> to vector<2x32xf32>
    %233 = arith.mulf %230, %196 : vector<2x32xf32>
    %234 = arith.mulf %229, %231 : vector<2x32xf32>
    %235 = arith.addf %233, %234 : vector<2x32xf32>
    %236 = math.tanh %235 : vector<2x32xf32>
    %237 = arith.mulf %232, %236 : vector<2x32xf32>
    %238 = vector.extract_strided_slice %8 {offsets = [6, 0], sizes = [1, 128], strides = [1, 1]} : vector<8x128xf32> to vector<1x128xf32>
    %239 = vector.broadcast %238 : vector<1x128xf32> to vector<2x128xf32>
    %240 = arith.addf %239, %13 : vector<2x128xf32>
    %cst_49 = arith.constant dense<0.000000e+00> : vector<2x128xf32>
    %241 = tpu.matmul %218, %14, %cst_49 {dimension_numbers = #tpu.dot_dimension_numbers<[1], [0], [0], [1], [0, 0, 1, 1], [], []>} : vector<2x32xf32>, vector<32x128xf32>, vector<2x128xf32> -> vector<2x128xf32>
    %242 = arith.addf %240, %241 : vector<2x128xf32>
    %243 = arith.negf %242 : vector<2x128xf32>
    %244 = math.exp %243 : vector<2x128xf32>
    %cst_50 = arith.constant 1.000000e+00 : f32
    %245 = vector.broadcast %cst_50 : f32 to vector<2x128xf32>
    %246 = arith.addf %245, %244 : vector<2x128xf32>
    %247 = arith.divf %245, %246 : vector<2x128xf32>
    %248 = math.tanh %242 : vector<2x128xf32>
    %249 = vector.extract_strided_slice %247 {offsets = [0, 0], sizes = [2, 32], strides = [1, 1]} : vector<2x128xf32> to vector<2x32xf32>
    %250 = vector.extract_strided_slice %247 {offsets = [0, 32], sizes = [2, 32], strides = [1, 1]} : vector<2x128xf32> to vector<2x32xf32>
    %251 = vector.extract_strided_slice %248 {offsets = [0, 64], sizes = [2, 32], strides = [1, 1]} : vector<2x128xf32> to vector<2x32xf32>
    %252 = vector.extract_strided_slice %247 {offsets = [0, 96], sizes = [2, 32], strides = [1, 1]} : vector<2x128xf32> to vector<2x32xf32>
    %253 = arith.mulf %250, %216 : vector<2x32xf32>
    %254 = arith.mulf %249, %251 : vector<2x32xf32>
    %255 = arith.addf %253, %254 : vector<2x32xf32>
    %256 = math.tanh %255 : vector<2x32xf32>
    %257 = arith.mulf %252, %256 : vector<2x32xf32>
    %258 = tpu.concatenate %218, %237 in 1 : vector<2x32xf32>, vector<2x32xf32> -> vector<2x64xf32>
    %cst_51 = arith.constant dense<0.000000e+00> : vector<2x128xf32>
    %259 = tpu.matmul %258, %16, %cst_51 {dimension_numbers = #tpu.dot_dimension_numbers<[1], [0], [0], [1], [0, 0, 1, 1], [], []>} : vector<2x64xf32>, vector<64x128xf32>, vector<2x128xf32> -> vector<2x128xf32>
    %260 = vector.broadcast %18 : vector<1x128xf32> to vector<2x128xf32>
    %261 = arith.addf %259, %260 : vector<2x128xf32>
    %262 = arith.negf %261 : vector<2x128xf32>
    %263 = math.exp %262 : vector<2x128xf32>
    %cst_52 = arith.constant 1.000000e+00 : f32
    %264 = vector.broadcast %cst_52 : f32 to vector<2x128xf32>
    %265 = arith.addf %264, %263 : vector<2x128xf32>
    %266 = arith.divf %264, %265 : vector<2x128xf32>
    %267 = math.tanh %261 : vector<2x128xf32>
    %268 = vector.extract_strided_slice %266 {offsets = [0, 0], sizes = [2, 32], strides = [1, 1]} : vector<2x128xf32> to vector<2x32xf32>
    %269 = vector.extract_strided_slice %266 {offsets = [0, 32], sizes = [2, 32], strides = [1, 1]} : vector<2x128xf32> to vector<2x32xf32>
    %270 = vector.extract_strided_slice %267 {offsets = [0, 64], sizes = [2, 32], strides = [1, 1]} : vector<2x128xf32> to vector<2x32xf32>
    %271 = vector.extract_strided_slice %266 {offsets = [0, 96], sizes = [2, 32], strides = [1, 1]} : vector<2x128xf32> to vector<2x32xf32>
    %272 = arith.mulf %269, %235 : vector<2x32xf32>
    %273 = arith.mulf %268, %270 : vector<2x32xf32>
    %274 = arith.addf %272, %273 : vector<2x32xf32>
    %275 = math.tanh %274 : vector<2x32xf32>
    %276 = arith.mulf %271, %275 : vector<2x32xf32>
    %277 = vector.extract_strided_slice %8 {offsets = [7, 0], sizes = [1, 128], strides = [1, 1]} : vector<8x128xf32> to vector<1x128xf32>
    %278 = vector.broadcast %277 : vector<1x128xf32> to vector<2x128xf32>
    %279 = arith.addf %278, %13 : vector<2x128xf32>
    %cst_53 = arith.constant dense<0.000000e+00> : vector<2x128xf32>
    %280 = tpu.matmul %257, %14, %cst_53 {dimension_numbers = #tpu.dot_dimension_numbers<[1], [0], [0], [1], [0, 0, 1, 1], [], []>} : vector<2x32xf32>, vector<32x128xf32>, vector<2x128xf32> -> vector<2x128xf32>
    %281 = arith.addf %279, %280 : vector<2x128xf32>
    %282 = arith.negf %281 : vector<2x128xf32>
    %283 = math.exp %282 : vector<2x128xf32>
    %cst_54 = arith.constant 1.000000e+00 : f32
    %284 = vector.broadcast %cst_54 : f32 to vector<2x128xf32>
    %285 = arith.addf %284, %283 : vector<2x128xf32>
    %286 = arith.divf %284, %285 : vector<2x128xf32>
    %287 = math.tanh %281 : vector<2x128xf32>
    %288 = vector.extract_strided_slice %286 {offsets = [0, 0], sizes = [2, 32], strides = [1, 1]} : vector<2x128xf32> to vector<2x32xf32>
    %289 = vector.extract_strided_slice %286 {offsets = [0, 32], sizes = [2, 32], strides = [1, 1]} : vector<2x128xf32> to vector<2x32xf32>
    %290 = vector.extract_strided_slice %287 {offsets = [0, 64], sizes = [2, 32], strides = [1, 1]} : vector<2x128xf32> to vector<2x32xf32>
    %291 = vector.extract_strided_slice %286 {offsets = [0, 96], sizes = [2, 32], strides = [1, 1]} : vector<2x128xf32> to vector<2x32xf32>
    %292 = arith.mulf %289, %255 : vector<2x32xf32>
    %293 = arith.mulf %288, %290 : vector<2x32xf32>
    %294 = arith.addf %292, %293 : vector<2x32xf32>
    %295 = math.tanh %294 : vector<2x32xf32>
    %296 = arith.mulf %291, %295 : vector<2x32xf32>
    %297 = tpu.concatenate %257, %276 in 1 : vector<2x32xf32>, vector<2x32xf32> -> vector<2x64xf32>
    %cst_55 = arith.constant dense<0.000000e+00> : vector<2x128xf32>
    %298 = tpu.matmul %297, %16, %cst_55 {dimension_numbers = #tpu.dot_dimension_numbers<[1], [0], [0], [1], [0, 0, 1, 1], [], []>} : vector<2x64xf32>, vector<64x128xf32>, vector<2x128xf32> -> vector<2x128xf32>
    %299 = vector.broadcast %18 : vector<1x128xf32> to vector<2x128xf32>
    %300 = arith.addf %298, %299 : vector<2x128xf32>
    %301 = arith.negf %300 : vector<2x128xf32>
    %302 = math.exp %301 : vector<2x128xf32>
    %cst_56 = arith.constant 1.000000e+00 : f32
    %303 = vector.broadcast %cst_56 : f32 to vector<2x128xf32>
    %304 = arith.addf %303, %302 : vector<2x128xf32>
    %305 = arith.divf %303, %304 : vector<2x128xf32>
    %306 = math.tanh %300 : vector<2x128xf32>
    %307 = vector.extract_strided_slice %305 {offsets = [0, 0], sizes = [2, 32], strides = [1, 1]} : vector<2x128xf32> to vector<2x32xf32>
    %308 = vector.extract_strided_slice %305 {offsets = [0, 32], sizes = [2, 32], strides = [1, 1]} : vector<2x128xf32> to vector<2x32xf32>
    %309 = vector.extract_strided_slice %306 {offsets = [0, 64], sizes = [2, 32], strides = [1, 1]} : vector<2x128xf32> to vector<2x32xf32>
    %310 = vector.extract_strided_slice %305 {offsets = [0, 96], sizes = [2, 32], strides = [1, 1]} : vector<2x128xf32> to vector<2x32xf32>
    %311 = arith.mulf %308, %274 : vector<2x32xf32>
    %312 = arith.mulf %307, %309 : vector<2x32xf32>
    %313 = arith.addf %311, %312 : vector<2x32xf32>
    %314 = math.tanh %313 : vector<2x32xf32>
    %315 = arith.mulf %310, %314 : vector<2x32xf32>
    %316 = tpu.concatenate %296, %315 in 1 : vector<2x32xf32>, vector<2x32xf32> -> vector<2x64xf32>
    %cst_57 = arith.constant dense<0.000000e+00> : vector<2x128xf32>
    %317 = tpu.matmul %316, %16, %cst_57 {dimension_numbers = #tpu.dot_dimension_numbers<[1], [0], [0], [1], [0, 0, 1, 1], [], []>} : vector<2x64xf32>, vector<64x128xf32>, vector<2x128xf32> -> vector<2x128xf32>
    %318 = vector.broadcast %18 : vector<1x128xf32> to vector<2x128xf32>
    %319 = arith.addf %317, %318 : vector<2x128xf32>
    %320 = arith.negf %319 : vector<2x128xf32>
    %321 = math.exp %320 : vector<2x128xf32>
    %cst_58 = arith.constant 1.000000e+00 : f32
    %322 = vector.broadcast %cst_58 : f32 to vector<2x128xf32>
    %323 = arith.addf %322, %321 : vector<2x128xf32>
    %324 = arith.divf %322, %323 : vector<2x128xf32>
    %325 = math.tanh %319 : vector<2x128xf32>
    %326 = vector.extract_strided_slice %324 {offsets = [0, 0], sizes = [2, 32], strides = [1, 1]} : vector<2x128xf32> to vector<2x32xf32>
    %327 = vector.extract_strided_slice %324 {offsets = [0, 32], sizes = [2, 32], strides = [1, 1]} : vector<2x128xf32> to vector<2x32xf32>
    %328 = vector.extract_strided_slice %325 {offsets = [0, 64], sizes = [2, 32], strides = [1, 1]} : vector<2x128xf32> to vector<2x32xf32>
    %329 = vector.extract_strided_slice %324 {offsets = [0, 96], sizes = [2, 32], strides = [1, 1]} : vector<2x128xf32> to vector<2x32xf32>
    %330 = arith.mulf %327, %313 : vector<2x32xf32>
    %331 = arith.mulf %326, %328 : vector<2x32xf32>
    %332 = arith.addf %330, %331 : vector<2x32xf32>
    %333 = math.tanh %332 : vector<2x32xf32>
    %334 = arith.mulf %329, %333 : vector<2x32xf32>
    %335 = tpu.concatenate %81, %120, %159, %198, %237, %276, %315, %334 in 1 : vector<2x32xf32>, vector<2x32xf32>, vector<2x32xf32>, vector<2x32xf32>, vector<2x32xf32>, vector<2x32xf32>, vector<2x32xf32>, vector<2x32xf32> -> vector<2x256xf32>
    %c0_59 = arith.constant 0 : index
    %c0_60 = arith.constant 0 : index
    %336 = vector.load %arg9[%c0_59, %c0_60] : memref<2x256xf32, #tpu.memory_space<vmem>>, vector<2x256xf32>
    tpu.vector_store %arg9[%c0_59, %c0_60], %335 {strides = array<i32>} : memref<2x256xf32, #tpu.memory_space<vmem>>, vector<2x256xf32>,
    return
  }
}

</mosaic_0001>

<bundles_post_ra>
// kernel: tpu_custom_call.1
= control target key start
LH: loop header
LB: loop body
LE: loop exit
PB: predicated region body
PF: predicated region fallthrough
CT: control target
= control target key end

     0   :  { %14 = vsyncpa [#allocation3], 0  ;;  %s2095_s0 = inlined_call_operand.hbm [shape: f32[8,32], index: 0, kind: input, shape index: {}]   ;;  %s2096_s1 = inlined_call_operand.hbm [shape: f32[2,4], index: 1, kind: input, shape index: {}]   ;;  %s2097_s2 = inlined_call_operand.hbm [shape: f32[4,32], index: 2, kind: input, shape index: {}]   ;;  %s2098_s3 = inlined_call_operand.vmem [shape: f32[1,32], index: 3, kind: input, shape index: {}]   ;;  %s2099_s4 = inlined_call_operand.hbm [shape: f32[32,128], index: 4, kind: input, shape index: {}]   ;;  %s2100_s5 = inlined_call_operand.hbm [shape: f32[32,128], index: 5, kind: input, shape index: {}]   ;;  %s2101_s6 = inlined_call_operand.vmem [shape: f32[1,128], index: 6, kind: input, shape index: {}]   ;;  %s2102_s7 = inlined_call_operand.hbm [shape: f32[1,64,128], index: 7, kind: input, shape index: {}]   ;;  %s2103_s8 = inlined_call_operand.vmem [shape: f32[1,1,128], index: 8, kind: input, shape index: {}]   ;;  %s2104_s9 = inlined_call_operand.hbm [shape: f32[2,256], index: 9, kind: output, shape index: {}]  }
   0x1   :  { %15 = vsyncpa [#allocation6], 0 }
   0x2   :  { %16 = vsyncpa [#allocation9], 0 }
   0x3   :  { %17 = vsyncpa [#allocation12], 0  ;;  %s35_s11 = sshll.u32 %s2096_s1, 4  ;;  %s36_s11 = int_to_ptr.hbm [resolvable:$true] %s35_s11 }
   0x4   :  { %18 = vsyncpa [#allocation4], 0  ;;  %s1677_s12 = smov [#allocation5]   ;;  %s58_s16 = sshll.u32 %s2099_s4, 4  ;;  %s59_s16 = int_to_ptr.hbm [resolvable:$true] %s58_s16 }
   0x5   :  { %s37_s13 = sshll.u32 %s1677_s12, 4  ;;  %s1678_s17 = smov [#allocation8]   ;;  %s38_s13 = int_to_ptr.vmem [resolvable:$true] %s37_s13 }
   0x6   :  { %40 = dma.hbm_to_vmem [thread:$0]  %s36_s11, 32, %s38_s13, [#allocation6]  }
   0x7   :  { %s60_s18 = sshll.u32 %s1678_s17, 4  ;;  %s1679_s19 = smov 128   ;;  %s61_s18 = int_to_ptr.vmem [resolvable:$true] %s60_s18 }
   0x8   :  { %s1680_s20 = smov 8   ;;  %s24_s1 = sshll.u32 %s2095_s0, 4  ;;  %s25_s1 = int_to_ptr.hbm [resolvable:$true] %s24_s1 }
   0x9   :  { %66 = dma.hbm_to_vmem [thread:$0]  %s59_s16, 512, %s61_s18, [#allocation9], %s1679_s19, %s1679_s19, %s1680_s20  }
   0xa   :  { %s1681_s23 = smov [#allocation2]   ;;  %s46_s4 = sshll.u32 %s2097_s2, 4  ;;  %s47_s4 = int_to_ptr.hbm [resolvable:$true] %s46_s4 }
   0xb   :  { %s26_s24 = sshll.u32 %s1681_s23, 4  ;;  %s1682_s27 = smov [#allocation7]   ;;  %s27_s24 = int_to_ptr.vmem [resolvable:$true] %s26_s24 }
   0xc   :  { %29 = dma.hbm_to_vmem [thread:$0]  %s25_s1, 128, %s27_s24, [#allocation3]  }
   0xd   :  { %s48_s28 = sshll.u32 %s1682_s27, 4  ;;  %s71_s10 = sshll.u32 %s2100_s5, 4  ;;  %s49_s28 = int_to_ptr.vmem [resolvable:$true] %s48_s28  ;;  %s72_s10 = int_to_ptr.hbm [resolvable:$true] %s71_s10 }
   0xe   :  { %51 = dma.hbm_to_vmem [thread:$0]  %s47_s4, 64, %s49_s28, [#allocation6]  }
   0xf   :  { %s86_s12 = sshll.u32 %s2102_s7, 4  ;;  %s1683_s13 = smov [#allocation10]   ;;  %s87_s12 = int_to_ptr.hbm [resolvable:$true] %s86_s12 }
  0x10   :  { %s73_s14 = sshll.u32 %s1683_s13, 4  ;;  %s1684_s2 = smov [#allocation11]   ;;  %s74_s14 = int_to_ptr.vmem [resolvable:$true] %s73_s14 }
  0x11   :  { %79 = dma.hbm_to_vmem [thread:$0]  %s72_s10, 512, %s74_s14, [#allocation9], %s1679_s19, %s1679_s19, %s1680_s20  }
  0x12   :  { %s88_s15 = sshll.u32 %s1684_s2, 4  ;;  %s89_s15 = int_to_ptr.vmem [resolvable:$true] %s88_s15 }
  0x13   :  { %94 = dma.hbm_to_vmem [thread:$0]  %s87_s12, 1024, %s89_s15, [#allocation12], %s1679_s19, %s1679_s19, %s1680_s20  }
  0x14   :  { %1667 = dma.done.wait [#allocation3], 128  }
  0x15   :  { %1668 = vsyncadd [#allocation3], 4294967168 }
  0x16   :  { %1669 = dma.done.wait [#allocation6], 96  }
  0x17   :  { %1670 = vsyncadd [#allocation6], 4294967200 }
  0x18   :  { %1671 = dma.done.wait [#allocation9], 1024  }
  0x19   :  { %1672 = vsyncadd [#allocation9], 4294966272 }
  0x1a   :  { %1673 = dma.done.wait [#allocation12], 1024  }
  0x1b   :  { %1674 = vsyncadd [#allocation12], 4294966272  ;;  %vm131_vm0 = vcmask 1043456   ;;  %vm127_vm1 = vcmask 31744   ;;  %v122_v0 = vld [vmem:[#allocation7] sm:$0xf] }
  0x1c   :  { %v121_v1 = vld [vmem:[#allocation5] sm:$0x3]  ;;  %1319 = vmatpush.msk.msra.mxu1 %vm131_vm0, %v122_v0  ;;  %v158_v3 = vld [vmem:[#allocation8 + $0x10] sm:$0xff]  ;;  %v157_v4 = vld [vmem:[#allocation8 + $0x8] sm:$0xff]  ;;  %vm160_vm2 = vcmask 261120   ;;  %v1685_v11 = vmov 0.0  }
  0x1d   :  { %v159_v2 = vld [vmem:[#allocation8 + $0x18] sm:$0xff]  ;;  %1320 = vmatmul.msk.f32.vlgmr.msra.gmra.mxu1 %vm127_vm1, %v121_v1  ;;  %v156_v6 = vld [vmem:[#allocation8] sm:$0xff]  ;;  %v1761_v7 = vld [vmem:[#allocation10 + $0x10] sm:$0xff]  ;;  %vm357_vm7 = vcmask 523264   ;;  %s1689_s22 = smov [#allocation13]   ;;  %s1306_s25 = sshll.u32 %s2104_s9, 4  ;;  %s1307_s25 = int_to_ptr.hbm [resolvable:$true] %s1306_s25 }
  0x1e   :  { %203 = vmatpush.msra.mxu2 %v159_v2  ;;  %176 = vmatpush.msrb.mxu1 %v159_v2  ;;  %v1758_v5 = vld [vmem:[#allocation10 + $0x18] sm:$0xff]  ;;  %v1765_v8 = vld [vmem:[#allocation10 + $0x8] sm:$0xff]  ;;  %v1767_v9 = vld [vmem:[#allocation10] sm:$0xff]  ;;  %s1304_s1 = sshll.u32 %s1689_s22, 4  ;;  %s1305_s1 = int_to_ptr.vmem [resolvable:$true] %s1304_s1 }
  0x1f   :  { %241 = vmatpush.msra.mxu3 %v1758_v5  ;;  %306 = vmatpush.msra.mxu0 %v1758_v5  ;;  %v155_v10 = vld [vmem:[#allocation2] sm:$0xff]  ;;  %v1808_v45 = vld [vmem:[#allocation11 + $0x28] sm:$0xff]  ;;  %v1813_v46 = vld [vmem:[#allocation11 + $0x20] sm:$0xff] }
  0x20   :  { %204 = vmatpush.msra.mxu2 %v158_v3  ;;  %177 = vmatpush.msrb.mxu1 %v158_v3  ;;  %v1367_v12 = vld [vmem:[%s2098_s3] ss:$0 sm:$0xff]  ;;  %s1686_s3 = smov 64   ;;  %v1802_v43 = vld [vmem:[#allocation11 + $0x38] sm:$0xff]  ;;  %v1828_v49 = vld [vmem:[#allocation11 + $0x8] sm:$0xff] }
  0x21   :  { %242 = vmatpush.msra.mxu3 %v1761_v7  ;;  %307 = vmatpush.msra.mxu0 %v1761_v7  ;;  %v1368_v16 = vld [vmem:[%s2101_s6] ss:$0 sm:$0xff]  ;;  %s1687_s6 = smov 32   ;;  %v1818_v47 = vld [vmem:[#allocation11 + $0x18] sm:$0xff]  ;;  %v1838_v52 = vld [vmem:[#allocation11] sm:$0xff] }
  0x22   :  { %205 = vmatpush.msra.mxu2 %v157_v4  ;;  %178 = vmatpush.msrb.mxu1 %v157_v4  ;;  %v1804_v44 = vld [vmem:[#allocation11 + $0x30] sm:$0xff] }
  0x23   :  { %243 = vmatpush.msra.mxu3 %v1765_v8  ;;  %308 = vmatpush.msra.mxu0 %v1765_v8  ;;  %v1823_v48 = vld [vmem:[#allocation11 + $0x10] sm:$0xff] }
  0x24   :  { %206 = vmatpush.msra.mxu2 %v156_v6  ;;  %179 = vmatpush.msrb.mxu1 %v156_v6  ;;  %v1871_v59 = vld [vmem:[%s2103_s8] ss:$0 sm:$0xff] }
  0x25   :  { %1321 = vmatmul.msk.f32.vlgmr.msrb.gmra.mxu1 %vm160_vm2, %v155_v10  ;;  %244 = vmatpush.msra.mxu3 %v1767_v9 }
  0x26   :  { %437 = vmatpush.msrb.mxu2 %v1758_v5  ;;  %245 = vmatmul.f32.vlgmr.msra.gmra.mxu3 %v1685_v11 }
  0x27   :  { %309 = vmatpush.msra.mxu0 %v1767_v9  ;;  %369 = vmatpush.msra.mxu1 %v1802_v43 }
  0x28   :  { %438 = vmatpush.msrb.mxu2 %v1761_v7  ;;  %500 = vmatpush.msrb.mxu3 %v1802_v43 }
  0x29   :  { %568 = vmatpush.msrb.mxu0 %v1758_v5  ;;  %370 = vmatpush.msra.mxu1 %v1804_v44 }
  0x2a   :  { %439 = vmatpush.msrb.mxu2 %v1765_v8  ;;  %501 = vmatpush.msrb.mxu3 %v1804_v44 }
  0x2b   :  { %569 = vmatpush.msrb.mxu0 %v1761_v7  ;;  %371 = vmatpush.msra.mxu1 %v1808_v45 }
  0x2c   :  { %440 = vmatpush.msrb.mxu2 %v1767_v9  ;;  %502 = vmatpush.msrb.mxu3 %v1808_v45 }
  0x2d   :  { %570 = vmatpush.msrb.mxu0 %v1765_v8  ;;  %372 = vmatpush.msra.mxu1 %v1813_v46 }
  0x2e   :  { %503 = vmatpush.msrb.mxu3 %v1813_v46 }
  0x2f   :  { %571 = vmatpush.msrb.mxu0 %v1767_v9  ;;  %373 = vmatpush.msra.mxu1 %v1818_v47 }
  0x30   :  { %504 = vmatpush.msrb.mxu3 %v1818_v47 }
  0x31   :  { %374 = vmatpush.msra.mxu1 %v1823_v48 }
  0x32   :  { %505 = vmatpush.msrb.mxu3 %v1823_v48 }
  0x33   :  { %375 = vmatpush.msra.mxu1 %v1828_v49 }
  0x34   :  { %506 = vmatpush.msrb.mxu3 %v1828_v49 }
  0x35   :  { %376 = vmatpush.msra.mxu1 %v1838_v52 }
  0x36   :  { %507 = vmatpush.msrb.mxu3 %v1838_v52 }
  0x37   :  { %762 = vmatpush.msrb.mxu1 %v1802_v43 }
  0x38   :  { %830 = vmatpush.msra.mxu3 %v1758_v5 }
  0x39   :  { %763 = vmatpush.msrb.mxu1 %v1804_v44 }
  0x3a   :  { %831 = vmatpush.msra.mxu3 %v1761_v7 }
  0x3b   :  { %764 = vmatpush.msrb.mxu1 %v1808_v45 }
  0x3c   :  { %832 = vmatpush.msra.mxu3 %v1765_v8 }
  0x3d   :  { %765 = vmatpush.msrb.mxu1 %v1813_v46 }
  0x3e   :  { %833 = vmatpush.msra.mxu3 %v1767_v9 }
  0x3f   :  { %766 = vmatpush.msrb.mxu1 %v1818_v47 }
  0x41   :  { %767 = vmatpush.msrb.mxu1 %v1823_v48 }
  0x43   :  { %768 = vmatpush.msrb.mxu1 %v1828_v49 }
  0x45   :  { %769 = vmatpush.msrb.mxu1 %v1838_v52 }
  0x9a   :  { %v152_v13 = vpop.f32.mrf.mxu1 }
  0x9b   :  { %v153_v14 = vadd.f32 %v1367_v12, %v152_v13 }
  0x9d   :  { %1322 = vmatmul.msk.f32.vlgmr.msra.gmra.mxu2 %vm160_vm2, %v153_v14 }
  0x9e   :  { %631 = vmatpush.msra.mxu2 %v1802_v43 }
  0xa0   :  { %632 = vmatpush.msra.mxu2 %v1804_v44 }
  0xa2   :  { %v1787_v15 = vpop.f32.mrf.mxu1  ;;  %633 = vmatpush.msra.mxu2 %v1808_v45 }
  0xa3   :  { %v224_v17 = vperm.slane %v1787_v15, 0  ;;  %v287_v55 = vperm.slane %v1787_v15, 1 }
  0xa4   :  { %634 = vmatpush.msra.mxu2 %v1813_v46 }
  0xa6   :  { %635 = vmatpush.msra.mxu2 %v1818_v47 }
  0xa8   :  { %636 = vmatpush.msra.mxu2 %v1823_v48 }
  0xa9   :  { %v246_v20 = vpop.f32.mrf.mxu3 }
  0xaa   :  { %637 = vmatpush.msra.mxu2 %v1828_v49 }
  0xac   :  { %638 = vmatpush.msra.mxu2 %v1838_v52 }
 0x120   :  { %v208_v18 = vpop.f32.mrf.mxu2 }
 0x121   :  { %v1793_v19 = vadd.f32 %v1368_v16, %v208_v18 }
 0x123   :  { %v225_v21 = vadd.f32 %v224_v17, %v1793_v19  ;;  %v288_v56 = vadd.f32 %v287_v55, %v1793_v19 }
 0x125   :  { %v249_v22 = vadd.f32 %v246_v20, %v225_v21 }
 0x127   :  { %1370 = vtanh.f32 %v249_v22  ;;  %v1323_v24 = vmul.f32 -1.442695, %v249_v22 }
 0x129   :  { %1372 = vpow2.f32 %v1323_v24 }
 0x12d   :  { %v1371_v23 = vpop.eup %1370 }
 0x12e   :  { %272 = vrot.lane.b32.xlu0 %v1371_v23, %s1686_s3 }
 0x12f   :  { %v1373_v25 = vpop.eup %1372 }
 0x130   :  { %v253_v26 = vadd.f32 1.0, %v1373_v25 }
 0x132   :  { %1374 = vrcp.f32 %v253_v26  ;;  %v265_v32 = vand.u32 2147483648, %v253_v26  ;;  %vm259_vm4 = vweird.f32 %v253_v26  ;;  %v263_v33 = vand.u32 2147483647, %v253_v26 }
 0x134   :  { %v266_v35 = vor.u32 1.1754944e-38, %v265_v32  ;;  %vm264_vm6 = vcmp.eq.f32.partialorder %v263_v33, 8.507059e+37 }
 0x138   :  { %v1375_v27 = vpop.eup %1374 }
 0x139   :  { %v255_v28 = vmul.f32 %v1375_v27, %v253_v26  ;;  %vm260_vm3 = vweird.f32 %v1375_v27 }
 0x13a   :  { %vm261_vm5 = vmor %vm259_vm4, %vm260_vm3 }
 0x13b   :  { %v256_v29 = vsub.f32 1.0, %v255_v28 }
 0x13d   :  { %v257_v30 = vmul.f32 %v1375_v27, %v256_v29 }
 0x13f   :  { %v258_v31 = vadd.f32 %v1375_v27, %v257_v30 }
 0x141   :  { %v262_v34 = vsel %vm261_vm5, %v1375_v27, %v258_v31 }
 0x142   :  { %v267_v37 = vsel %vm264_vm6, %v266_v35, %v262_v34 }
 0x143   :  { %v270_v39 = vmul.f32 0.0, %v267_v37 }
 0x1a0   :  { %v273_v36 = vpop.permute.xlu0 %272 }
 0x1a1   :  { %v275_v38 = vmul.f32 %v273_v36, %v267_v37 }
 0x1a3   :  { %277 = vrot.lane.b32.xlu0 %v275_v38, %s1687_s6 }
 0x215   :  { %v278_v40 = vpop.permute.xlu0 %277 }
 0x216   :  { %v1798_v41 = vadd.f32 %v278_v40, %v270_v39 }
 0x218   :  { %1376 = vtanh.f32 %v1798_v41 }
 0x21e   :  { %v1377_v42 = vpop.eup %1376 }
 0x21f   :  { %283 = vrot.lane.b32.xlu1 %v1377_v42, %s1686_s3 }
 0x291   :  { %v284_v50 = vpop.permute.xlu1 %283 }
 0x292   :  { %v286_v51 = vmul.f32 %v284_v50, %v267_v37 }
 0x294   :  { %290 = vrot.lane.b32.xlu1 %v286_v51, %s1687_s6 }
 0x306   :  { %v291_v53 = vpop.permute.xlu1 %290 }
 0x307   :  { %v353_v54 = vsel %vm160_vm2, %v291_v53, 0.0  ;;  %1324 = vmatmul.msk.f32.vlgmr.msra.gmra.mxu0 %vm160_vm2, %v291_v53 }
 0x308   :  { %1326 = vmatmul.msk.f32.vlgmr.msra.gmra.mxu1 %vm357_vm7, %v353_v54  ;;  %699 = vmatpush.msra.mxu0 %v1758_v5 }
 0x309   :  { %1092 = vmatpush.msra.mxu1 %v1758_v5 }
 0x30a   :  { %700 = vmatpush.msra.mxu0 %v1761_v7 }
 0x30b   :  { %1093 = vmatpush.msra.mxu1 %v1761_v7 }
 0x30c   :  { %701 = vmatpush.msra.mxu0 %v1765_v8 }
 0x30d   :  { %1094 = vmatpush.msra.mxu1 %v1765_v8 }
 0x30e   :  { %702 = vmatpush.msra.mxu0 %v1767_v9 }
 0x30f   :  { %1095 = vmatpush.msra.mxu1 %v1767_v9 }
 0x384   :  { %v311_v57 = vpop.f32.mrf.mxu0 }
 0x385   :  { %v314_v58 = vadd.f32 %v311_v57, %v288_v56  ;;  %v378_v60 = vpop.f32.mrf.mxu1 }
 0x386   :  { %v379_v61 = vadd.f32 %v1871_v59, %v378_v60 }
 0x387   :  { %1378 = vtanh.f32 %v314_v58  ;;  %v1325_v0 = vmul.f32 -1.442695, %v314_v58 }
 0x388   :  { %1380 = vtanh.f32 %v379_v61  ;;  %v1327_v1 = vmul.f32 -1.442695, %v379_v61 }
 0x389   :  { %1382 = vpow2.f32 %v1325_v0 }
 0x38a   :  { %1384 = vpow2.f32 %v1327_v1 }
 0x38d   :  { %v1379_v62 = vpop.eup %1378 }
 0x38e   :  { %337 = vrot.lane.b32.xlu2 %v1379_v62, %s1686_s3  ;;  %v1381_v63 = vpop.eup %1380 }
 0x38f   :  { %v1383_v2 = vpop.eup %1382 }
 0x390   :  { %v318_v3 = vadd.f32 1.0, %v1383_v2  ;;  %v1385_v4 = vpop.eup %1384 }
 0x391   :  { %v384_v6 = vadd.f32 1.0, %v1385_v4 }
 0x392   :  { %1386 = vrcp.f32 %v318_v3  ;;  %v330_v20 = vand.u32 2147483648, %v318_v3  ;;  %vm324_vm9 = vweird.f32 %v318_v3  ;;  %v328_v21 = vand.u32 2147483647, %v318_v3 }
 0x393   :  { %1388 = vrcp.f32 %v384_v6  ;;  %v396_v29 = vand.u32 2147483648, %v384_v6  ;;  %vm390_vm13 = vweird.f32 %v384_v6  ;;  %v394_v30 = vand.u32 2147483647, %v384_v6 }
 0x394   :  { %v331_v24 = vor.u32 1.1754944e-38, %v330_v20  ;;  %vm329_vm11 = vcmp.eq.f32.partialorder %v328_v21, 8.507059e+37 }
 0x395   :  { %v397_v32 = vor.u32 1.1754944e-38, %v396_v29  ;;  %vm395_vm15 = vcmp.eq.f32.partialorder %v394_v30, 8.507059e+37 }
 0x396   :  { %403 = vrot.lane.b32.xlu2 %v1381_v63, %s1686_s3 }
 0x398   :  { %v1387_v10 = vpop.eup %1386 }
 0x399   :  { %v320_v11 = vmul.f32 %v1387_v10, %v318_v3  ;;  %v1389_v13 = vpop.eup %1388  ;;  %vm325_vm8 = vweird.f32 %v1387_v10 }
 0x39a   :  { %v386_v16 = vmul.f32 %v1389_v13, %v384_v6  ;;  %vm326_vm10 = vmor %vm324_vm9, %vm325_vm8  ;;  %vm391_vm12 = vweird.f32 %v1389_v13 }
 0x39b   :  { %v321_v12 = vsub.f32 1.0, %v320_v11  ;;  %vm392_vm14 = vmor %vm390_vm13, %vm391_vm12 }
 0x39c   :  { %v387_v18 = vsub.f32 1.0, %v386_v16 }
 0x39d   :  { %v322_v14 = vmul.f32 %v1387_v10, %v321_v12 }
 0x39e   :  { %v388_v23 = vmul.f32 %v1389_v13, %v387_v18 }
 0x39f   :  { %v323_v17 = vadd.f32 %v1387_v10, %v322_v14 }
 0x3a0   :  { %v389_v28 = vadd.f32 %v1389_v13, %v388_v23 }
 0x3a1   :  { %v327_v22 = vsel %vm326_vm10, %v1387_v10, %v323_v17 }
 0x3a2   :  { %v332_v26 = vsel %vm329_vm11, %v331_v24, %v327_v22  ;;  %v393_v31 = vsel %vm392_vm14, %v1389_v13, %v389_v28 }
 0x3a3   :  { %v398_v34 = vsel %vm395_vm15, %v397_v32, %v393_v31  ;;  %v335_v36 = vmul.f32 %v332_v26, %v1798_v41 }
 0x3a4   :  { %v401_v39 = vmul.f32 0.0, %v398_v34 }
 0x3e8   :  { %v338_v25 = vpop.permute.xlu2 %337 }
 0x3e9   :  { %v340_v27 = vmul.f32 %v338_v25, %v332_v26 }
 0x3eb   :  { %342 = vrot.lane.b32.xlu0 %v340_v27, %s1687_s6 }
 0x3f0   :  { %v404_v33 = vpop.permute.xlu2 %403 }
 0x3f1   :  { %v406_v35 = vmul.f32 %v404_v33, %v398_v34 }
 0x3f3   :  { %408 = vrot.lane.b32.xlu1 %v406_v35, %s1687_s6 }
 0x45d   :  { %v343_v37 = vpop.permute.xlu0 %342 }
 0x45e   :  { %v1879_v38 = vadd.f32 %v343_v37, %v335_v36 }
 0x460   :  { %1390 = vtanh.f32 %v1879_v38 }
 0x465   :  { %v409_v40 = vpop.permute.xlu1 %408 }
 0x466   :  { %v1391_v42 = vpop.eup %1390  ;;  %v1882_v50 = vadd.f32 %v409_v40, %v401_v39 }
 0x467   :  { %348 = vrot.lane.b32.xlu2 %v1391_v42, %s1686_s3 }
 0x468   :  { %1392 = vtanh.f32 %v1882_v50 }
 0x46e   :  { %v1393_v51 = vpop.eup %1392 }
 0x46f   :  { %414 = vrot.lane.b32.xlu0 %v1393_v51, %s1686_s3 }
 0x4c1   :  { %v349_v53 = vpop.permute.xlu2 %348 }
 0x4c2   :  { %v351_v54 = vmul.f32 %v349_v53, %v332_v26 }
 0x4c4   :  { %421 = vrot.lane.b32.xlu1 %v351_v54, %s1687_s6 }
 0x4e1   :  { %v415_v41 = vpop.permute.xlu0 %414 }
 0x4e2   :  { %v1888_v55 = vmul.f32 %v415_v41, %v398_v34 }
 0x4e4   :  { %485 = vrot.lane.b32.xlu2 %v1888_v55, %s1686_s3 }
 0x536   :  { %v422_v56 = vpop.permute.xlu1 %421 }
 0x537   :  { %1328 = vmatmul.msk.f32.vlgmr.msrb.gmra.mxu2 %vm160_vm2, %v422_v56 }
 0x538   :  { %961 = vmatpush.msrb.mxu2 %v1758_v5  ;;  %v418_v5 = vperm.slane %v1787_v15, 2 }
 0x53a   :  { %962 = vmatpush.msrb.mxu2 %v1761_v7  ;;  %v419_v7 = vadd.f32 %v418_v5, %v1793_v19 }
 0x53c   :  { %963 = vmatpush.msrb.mxu2 %v1765_v8 }
 0x53e   :  { %v486_v57 = vpop.permute.xlu2 %485  ;;  %964 = vmatpush.msrb.mxu2 %v1767_v9 }
 0x53f   :  { %v488_v58 = vsel %vm160_vm2, %v422_v56, %v486_v57 }
 0x540   :  { %1330 = vmatmul.msk.f32.vlgmr.msrb.gmra.mxu3 %vm357_vm7, %v488_v58 }
 0x541   :  { %1024 = vmatpush.msrb.mxu3 %v1802_v43 }
 0x543   :  { %1025 = vmatpush.msrb.mxu3 %v1804_v44 }
 0x545   :  { %1026 = vmatpush.msrb.mxu3 %v1808_v45 }
 0x547   :  { %1027 = vmatpush.msrb.mxu3 %v1813_v46 }
 0x549   :  { %1028 = vmatpush.msrb.mxu3 %v1818_v47 }
 0x54b   :  { %1029 = vmatpush.msrb.mxu3 %v1823_v48 }
 0x54d   :  { %1030 = vmatpush.msrb.mxu3 %v1828_v49 }
 0x54f   :  { %1031 = vmatpush.msrb.mxu3 %v1838_v52 }
 0x5ba   :  { %v442_v8 = vpop.f32.mrf.mxu2 }
 0x5bb   :  { %v445_v9 = vadd.f32 %v442_v8, %v419_v7  ;;  %v549_v7 = vperm.slane %v1787_v15, 3 }
 0x5bd   :  { %1394 = vtanh.f32 %v445_v9  ;;  %v1329_v0 = vmul.f32 -1.442695, %v445_v9  ;;  %v550_v8 = vadd.f32 %v549_v7, %v1793_v19 }
 0x5c3   :  { %v1395_v60 = vpop.eup %1394  ;;  %v509_v61 = vpop.f32.mrf.mxu3 }
 0x5c4   :  { %v510_v62 = vadd.f32 %v1871_v59, %v509_v61  ;;  %468 = vrot.lane.b32.xlu0 %v1395_v60, %s1686_s3 }
 0x5c6   :  { %1396 = vtanh.f32 %v510_v62  ;;  %v1331_v1 = vmul.f32 -1.442695, %v510_v62 }
 0x5c7   :  { %1398 = vpow2.f32 %v1329_v0 }
 0x5c8   :  { %1400 = vpow2.f32 %v1331_v1 }
 0x5cc   :  { %v1397_v63 = vpop.eup %1396 }
 0x5cd   :  { %534 = vrot.lane.b32.xlu1 %v1397_v63, %s1686_s3  ;;  %v1399_v2 = vpop.eup %1398 }
 0x5ce   :  { %v449_v3 = vadd.f32 1.0, %v1399_v2  ;;  %v1401_v4 = vpop.eup %1400 }
 0x5cf   :  { %v515_v6 = vadd.f32 1.0, %v1401_v4 }
 0x5d0   :  { %1402 = vrcp.f32 %v449_v3  ;;  %v461_v18 = vand.u32 2147483648, %v449_v3  ;;  %vm455_vm1 = vweird.f32 %v449_v3  ;;  %v459_v21 = vand.u32 2147483647, %v449_v3 }
 0x5d1   :  { %1404 = vrcp.f32 %v515_v6  ;;  %v527_v29 = vand.u32 2147483648, %v515_v6  ;;  %vm521_vm6 = vweird.f32 %v515_v6  ;;  %v525_v30 = vand.u32 2147483647, %v515_v6 }
 0x5d2   :  { %v462_v23 = vor.u32 1.1754944e-38, %v461_v18  ;;  %vm460_vm4 = vcmp.eq.f32.partialorder %v459_v21, 8.507059e+37 }
 0x5d3   :  { %v528_v32 = vor.u32 1.1754944e-38, %v527_v29  ;;  %vm526_vm9 = vcmp.eq.f32.partialorder %v525_v30, 8.507059e+37 }
 0x5d6   :  { %v1403_v10 = vpop.eup %1402 }
 0x5d7   :  { %v451_v11 = vmul.f32 %v1403_v10, %v449_v3  ;;  %v1405_v13 = vpop.eup %1404  ;;  %vm456_vm0 = vweird.f32 %v1403_v10 }
 0x5d8   :  { %v517_v16 = vmul.f32 %v1405_v13, %v515_v6  ;;  %vm457_vm3 = vmor %vm455_vm1, %vm456_vm0  ;;  %vm522_vm5 = vweird.f32 %v1405_v13 }
 0x5d9   :  { %v452_v12 = vsub.f32 1.0, %v451_v11  ;;  %vm523_vm8 = vmor %vm521_vm6, %vm522_vm5 }
 0x5da   :  { %v518_v20 = vsub.f32 1.0, %v517_v16 }
 0x5db   :  { %v453_v14 = vmul.f32 %v1403_v10, %v452_v12 }
 0x5dc   :  { %v519_v24 = vmul.f32 %v1405_v13, %v518_v20 }
 0x5dd   :  { %v454_v17 = vadd.f32 %v1403_v10, %v453_v14 }
 0x5de   :  { %v520_v28 = vadd.f32 %v1405_v13, %v519_v24 }
 0x5df   :  { %v458_v22 = vsel %vm457_vm3, %v1403_v10, %v454_v17 }
 0x5e0   :  { %v463_v25 = vsel %vm460_vm4, %v462_v23, %v458_v22  ;;  %v524_v31 = vsel %vm523_vm8, %v1405_v13, %v520_v28 }
 0x5e1   :  { %v529_v34 = vsel %vm526_vm9, %v528_v32, %v524_v31  ;;  %v466_v36 = vmul.f32 %v463_v25, %v1879_v38 }
 0x5e2   :  { %v532_v42 = vmul.f32 %v529_v34, %v1882_v50 }
 0x636   :  { %v469_v26 = vpop.permute.xlu0 %468 }
 0x637   :  { %v471_v27 = vmul.f32 %v469_v26, %v463_v25 }
 0x639   :  { %473 = vrot.lane.b32.xlu2 %v471_v27, %s1687_s6 }
 0x63f   :  { %v535_v33 = vpop.permute.xlu1 %534 }
 0x640   :  { %v537_v35 = vmul.f32 %v535_v33, %v529_v34 }
 0x642   :  { %539 = vrot.lane.b32.xlu0 %v537_v35, %s1687_s6 }
 0x693   :  { %v474_v37 = vpop.permute.xlu2 %473 }
 0x694   :  { %v1915_v39 = vadd.f32 %v474_v37, %v466_v36 }
 0x696   :  { %1406 = vtanh.f32 %v1915_v39 }
 0x69c   :  { %v1407_v40 = vpop.eup %1406 }
 0x69d   :  { %479 = vrot.lane.b32.xlu1 %v1407_v40, %s1686_s3 }
 0x6b4   :  { %v540_v51 = vpop.permute.xlu0 %539 }
 0x6b5   :  { %v1920_v53 = vadd.f32 %v540_v51, %v532_v42 }
 0x6b7   :  { %1408 = vtanh.f32 %v1920_v53 }
 0x6bd   :  { %v1409_v54 = vpop.eup %1408 }
 0x6be   :  { %545 = vrot.lane.b32.xlu2 %v1409_v54, %s1686_s3 }
 0x70f   :  { %v480_v41 = vpop.permute.xlu1 %479 }
 0x710   :  { %v482_v38 = vmul.f32 %v480_v41, %v463_v25 }
 0x712   :  { %552 = vrot.lane.b32.xlu0 %v482_v38, %s1687_s6 }
 0x718   :  { %v546_v56 = vpop.permute.xlu2 %545 }
 0x719   :  { %v548_v57 = vmul.f32 %v546_v56, %v529_v34 }
 0x71b   :  { %616 = vrot.lane.b32.xlu1 %v548_v57, %s1686_s3 }
 0x784   :  { %v553_v58 = vpop.permute.xlu0 %552 }
 0x785   :  { %1332 = vmatmul.msk.f32.vlgmr.msrb.gmra.mxu0 %vm160_vm2, %v553_v58 }
 0x786   :  { %893 = vmatpush.msrb.mxu0 %v1802_v43 }
 0x788   :  { %894 = vmatpush.msrb.mxu0 %v1804_v44 }
 0x78a   :  { %895 = vmatpush.msrb.mxu0 %v1808_v45 }
 0x78c   :  { %896 = vmatpush.msrb.mxu0 %v1813_v46 }
 0x78d   :  { %v1931_v50 = vpop.permute.xlu1 %616 }
 0x78e   :  { %v619_v5 = vsel %vm160_vm2, %v553_v58, %v1931_v50  ;;  %897 = vmatpush.msrb.mxu0 %v1818_v47 }
 0x78f   :  { %1334 = vmatmul.msk.f32.vlgmr.msra.gmra.mxu2 %vm357_vm7, %v619_v5 }
 0x790   :  { %898 = vmatpush.msrb.mxu0 %v1823_v48  ;;  %1155 = vmatpush.msra.mxu2 %v1802_v43 }
 0x792   :  { %899 = vmatpush.msrb.mxu0 %v1828_v49  ;;  %1156 = vmatpush.msra.mxu2 %v1804_v44 }
 0x794   :  { %900 = vmatpush.msrb.mxu0 %v1838_v52  ;;  %1157 = vmatpush.msra.mxu2 %v1808_v45 }
 0x796   :  { %1158 = vmatpush.msra.mxu2 %v1813_v46 }
 0x798   :  { %1159 = vmatpush.msra.mxu2 %v1818_v47 }
 0x79a   :  { %1160 = vmatpush.msra.mxu2 %v1823_v48 }
 0x79c   :  { %1161 = vmatpush.msra.mxu2 %v1828_v49 }
 0x79e   :  { %1162 = vmatpush.msra.mxu2 %v1838_v52 }
 0x802   :  { %v573_v9 = vpop.f32.mrf.mxu0 }
 0x803   :  { %v576_v60 = vadd.f32 %v573_v9, %v550_v8 }
 0x805   :  { %1410 = vtanh.f32 %v576_v60  ;;  %v1333_v1 = vmul.f32 -1.442695, %v576_v60 }
 0x80b   :  { %v1411_v61 = vpop.eup %1410 }
 0x80c   :  { %599 = vrot.lane.b32.xlu2 %v1411_v61, %s1686_s3 }
 0x812   :  { %v640_v62 = vpop.f32.mrf.mxu2 }
 0x813   :  { %v641_v63 = vadd.f32 %v1871_v59, %v640_v62 }
 0x815   :  { %1412 = vtanh.f32 %v641_v63  ;;  %v1335_v14 = vmul.f32 -1.442695, %v641_v63 }
 0x816   :  { %1414 = vpow2.f32 %v1333_v1 }
 0x81b   :  { %v1413_v0 = vpop.eup %1412 }
 0x81c   :  { %665 = vrot.lane.b32.xlu0 %v1413_v0, %s1686_s3  ;;  %v1415_v2 = vpop.eup %1414 }
 0x81d   :  { %v580_v3 = vadd.f32 1.0, %v1415_v2 }
 0x81f   :  { %1416 = vrcp.f32 %v580_v3  ;;  %v592_v13 = vand.u32 2147483648, %v580_v3  ;;  %vm586_vm11 = vweird.f32 %v580_v3  ;;  %v590_v16 = vand.u32 2147483647, %v580_v3 }
 0x820   :  { %1418 = vpow2.f32 %v1335_v14 }
 0x821   :  { %v593_v18 = vor.u32 1.1754944e-38, %v592_v13  ;;  %vm591_vm13 = vcmp.eq.f32.partialorder %v590_v16, 8.507059e+37 }
 0x825   :  { %v1417_v4 = vpop.eup %1416 }
 0x826   :  { %v582_v6 = vmul.f32 %v1417_v4, %v580_v3  ;;  %vm587_vm10 = vweird.f32 %v1417_v4  ;;  %v1419_v23 = vpop.eup %1418 }
 0x827   :  { %vm588_vm12 = vmor %vm586_vm11, %vm587_vm10  ;;  %v646_v24 = vadd.f32 1.0, %v1419_v23 }
 0x828   :  { %v583_v10 = vsub.f32 1.0, %v582_v6 }
 0x829   :  { %1420 = vrcp.f32 %v646_v24  ;;  %v658_v30 = vand.u32 2147483648, %v646_v24  ;;  %vm652_vm15 = vweird.f32 %v646_v24  ;;  %v656_v31 = vand.u32 2147483647, %v646_v24 }
 0x82a   :  { %v584_v11 = vmul.f32 %v1417_v4, %v583_v10 }
 0x82b   :  { %v659_v33 = vor.u32 1.1754944e-38, %v658_v30  ;;  %vm657_vm1 = vcmp.eq.f32.partialorder %v656_v31, 8.507059e+37 }
 0x82c   :  { %v585_v12 = vadd.f32 %v1417_v4, %v584_v11 }
 0x82e   :  { %v589_v17 = vsel %vm588_vm12, %v1417_v4, %v585_v12 }
 0x82f   :  { %v594_v21 = vsel %vm591_vm13, %v593_v18, %v589_v17  ;;  %v1421_v25 = vpop.eup %1420 }
 0x830   :  { %v648_v26 = vmul.f32 %v1421_v25, %v646_v24  ;;  %vm653_vm14 = vweird.f32 %v1421_v25  ;;  %v597_v37 = vmul.f32 %v594_v21, %v1915_v39 }
 0x831   :  { %vm654_vm0 = vmor %vm652_vm15, %vm653_vm14 }
 0x832   :  { %v649_v27 = vsub.f32 1.0, %v648_v26 }
 0x834   :  { %v650_v28 = vmul.f32 %v1421_v25, %v649_v27 }
 0x836   :  { %v651_v29 = vadd.f32 %v1421_v25, %v650_v28 }
 0x838   :  { %v655_v32 = vsel %vm654_vm0, %v1421_v25, %v651_v29 }
 0x839   :  { %v660_v35 = vsel %vm657_vm1, %v659_v33, %v655_v32 }
 0x83a   :  { %v663_v54 = vmul.f32 %v660_v35, %v1920_v53 }
 0x866   :  { %v600_v20 = vpop.permute.xlu2 %599 }
 0x867   :  { %v602_v22 = vmul.f32 %v600_v20, %v594_v21 }
 0x869   :  { %604 = vrot.lane.b32.xlu1 %v602_v22, %s1687_s6 }
 0x88e   :  { %v666_v34 = vpop.permute.xlu0 %665 }
 0x88f   :  { %v668_v36 = vmul.f32 %v666_v34, %v660_v35 }
 0x891   :  { %670 = vrot.lane.b32.xlu2 %v668_v36, %s1687_s6 }
 0x8db   :  { %v605_v40 = vpop.permute.xlu1 %604 }
 0x8dc   :  { %v1956_v42 = vadd.f32 %v605_v40, %v597_v37 }
 0x8de   :  { %1422 = vtanh.f32 %v1956_v42 }
 0x8e4   :  { %v1423_v51 = vpop.eup %1422 }
 0x8e5   :  { %610 = vrot.lane.b32.xlu0 %v1423_v51, %s1686_s3 }
 0x8eb   :  { %v671_v41 = vpop.permute.xlu2 %670 }
 0x8ec   :  { %v1961_v38 = vadd.f32 %v671_v41, %v663_v54 }
 0x8ee   :  { %1424 = vtanh.f32 %v1961_v38 }
 0x8f4   :  { %v1425_v56 = vpop.eup %1424 }
 0x8f5   :  { %676 = vrot.lane.b32.xlu1 %v1425_v56, %s1686_s3 }
 0x957   :  { %v611_v57 = vpop.permute.xlu0 %610 }
 0x958   :  { %v613_v39 = vmul.f32 %v611_v57, %v594_v21 }
 0x95a   :  { %683 = vrot.lane.b32.xlu2 %v613_v39, %s1687_s6  ;;  %v811_v39 = vperm.slane %v1787_v15, 5 }
 0x967   :  { %v677_v58 = vpop.permute.xlu1 %676 }
 0x968   :  { %v1966_v5 = vmul.f32 %v677_v58, %v660_v35  ;;  %v812_v58 = vadd.f32 %v811_v39, %v1793_v19 }
 0x96a   :  { %747 = vrot.lane.b32.xlu0 %v1966_v5, %s1686_s3 }
 0x9b4   :  { %v684_v7 = vpop.permute.xlu2 %683 }
 0x9b5   :  { %1336 = vmatmul.msk.f32.vlgmr.msra.gmra.mxu0 %vm160_vm2, %v684_v7 }
 0x9b6   :  { %1224 = vmatpush.msra.mxu0 %v1802_v43  ;;  %v680_v43 = vperm.slane %v1787_v15, 4 }
 0x9b8   :  { %1225 = vmatpush.msra.mxu0 %v1804_v44  ;;  %v681_v44 = vadd.f32 %v680_v43, %v1793_v19 }
 0x9ba   :  { %1226 = vmatpush.msra.mxu0 %v1808_v45 }
 0x9bc   :  { %1227 = vmatpush.msra.mxu0 %v1813_v46 }
 0x9be   :  { %1228 = vmatpush.msra.mxu0 %v1818_v47 }
 0x9c0   :  { %1229 = vmatpush.msra.mxu0 %v1823_v48 }
 0x9c2   :  { %1230 = vmatpush.msra.mxu0 %v1828_v49 }
 0x9c4   :  { %1231 = vmatpush.msra.mxu0 %v1838_v52 }
 0x9dc   :  { %v748_v53 = vpop.permute.xlu0 %747 }
 0x9dd   :  { %v750_v8 = vsel %vm160_vm2, %v684_v7, %v748_v53 }
 0x9de   :  { %1338 = vmatmul.msk.f32.vlgmr.msrb.gmra.mxu1 %vm357_vm7, %v750_v8 }
 0xa32   :  { %v704_v45 = vpop.f32.mrf.mxu0 }
 0xa33   :  { %v707_v9 = vadd.f32 %v704_v45, %v681_v44 }
 0xa35   :  { %1426 = vtanh.f32 %v707_v9  ;;  %v1337_v52 = vmul.f32 -1.442695, %v707_v9 }
 0xa3b   :  { %v1427_v46 = vpop.eup %1426 }
 0xa3c   :  { %730 = vrot.lane.b32.xlu1 %v1427_v46, %s1686_s3 }
 0xa5b   :  { %v771_v47 = vpop.f32.mrf.mxu1 }
 0xa5c   :  { %v772_v48 = vadd.f32 %v1871_v59, %v771_v47 }
 0xa5e   :  { %1428 = vtanh.f32 %v772_v48  ;;  %v1339_v62 = vmul.f32 -1.442695, %v772_v48 }
 0xa5f   :  { %1430 = vpow2.f32 %v1337_v52 }
 0xa64   :  { %v1429_v49 = vpop.eup %1428 }
 0xa65   :  { %796 = vrot.lane.b32.xlu2 %v1429_v49, %s1686_s3  ;;  %v1431_v60 = vpop.eup %1430 }
 0xa66   :  { %v711_v61 = vadd.f32 1.0, %v1431_v60 }
 0xa68   :  { %1432 = vrcp.f32 %v711_v61  ;;  %v723_v10 = vand.u32 2147483648, %v711_v61  ;;  %vm717_vm4 = vweird.f32 %v711_v61  ;;  %v721_v12 = vand.u32 2147483647, %v711_v61 }
 0xa69   :  { %1434 = vpow2.f32 %v1339_v62 }
 0xa6a   :  { %v724_v14 = vor.u32 1.1754944e-38, %v723_v10  ;;  %vm722_vm6 = vcmp.eq.f32.partialorder %v721_v12, 8.507059e+37 }
 0xa6e   :  { %v1433_v63 = vpop.eup %1432 }
 0xa6f   :  { %v713_v0 = vmul.f32 %v1433_v63, %v711_v61  ;;  %v1435_v1 = vpop.eup %1434  ;;  %vm718_vm3 = vweird.f32 %v1433_v63 }
 0xa70   :  { %v777_v2 = vadd.f32 1.0, %v1435_v1  ;;  %vm719_vm5 = vmor %vm717_vm4, %vm718_vm3 }
 0xa71   :  { %v714_v3 = vsub.f32 1.0, %v713_v0 }
 0xa72   :  { %1436 = vrcp.f32 %v777_v2  ;;  %v789_v24 = vand.u32 2147483648, %v777_v2  ;;  %vm783_vm9 = vweird.f32 %v777_v2  ;;  %v787_v25 = vand.u32 2147483647, %v777_v2 }
 0xa73   :  { %v715_v4 = vmul.f32 %v1433_v63, %v714_v3 }
 0xa74   :  { %v790_v27 = vor.u32 1.1754944e-38, %v789_v24  ;;  %vm788_vm11 = vcmp.eq.f32.partialorder %v787_v25, 8.507059e+37 }
 0xa75   :  { %v716_v6 = vadd.f32 %v1433_v63, %v715_v4 }
 0xa77   :  { %v720_v13 = vsel %vm719_vm5, %v1433_v63, %v716_v6 }
 0xa78   :  { %v1437_v11 = vpop.eup %1436  ;;  %v725_v17 = vsel %vm722_vm6, %v724_v14, %v720_v13 }
 0xa79   :  { %v779_v16 = vmul.f32 %v1437_v11, %v777_v2  ;;  %vm784_vm8 = vweird.f32 %v1437_v11  ;;  %v728_v31 = vmul.f32 %v725_v17, %v1956_v42 }
 0xa7a   :  { %vm785_vm10 = vmor %vm783_vm9, %vm784_vm8 }
 0xa7b   :  { %v780_v21 = vsub.f32 1.0, %v779_v16 }
 0xa7d   :  { %v781_v22 = vmul.f32 %v1437_v11, %v780_v21 }
 0xa7f   :  { %v782_v23 = vadd.f32 %v1437_v11, %v781_v22 }
 0xa81   :  { %v786_v26 = vsel %vm785_vm10, %v1437_v11, %v782_v23 }
 0xa82   :  { %v791_v29 = vsel %vm788_vm11, %v790_v27, %v786_v26 }
 0xa83   :  { %v794_v35 = vmul.f32 %v791_v29, %v1961_v38 }
 0xaae   :  { %v731_v18 = vpop.permute.xlu1 %730 }
 0xaaf   :  { %v733_v20 = vmul.f32 %v731_v18, %v725_v17 }
 0xab1   :  { %735 = vrot.lane.b32.xlu0 %v733_v20, %s1687_s6 }
 0xabf   :  { %v797_v28 = vpop.permute.xlu2 %796 }
 0xac0   :  { %v799_v30 = vmul.f32 %v797_v28, %v791_v29 }
 0xac2   :  { %801 = vrot.lane.b32.xlu1 %v799_v30, %s1687_s6 }
 0xb23   :  { %v736_v32 = vpop.permute.xlu0 %735 }
 0xb24   :  { %v1989_v33 = vadd.f32 %v736_v32, %v728_v31 }
 0xb26   :  { %1438 = vtanh.f32 %v1989_v33 }
 0xb2c   :  { %v1439_v34 = vpop.eup %1438 }
 0xb2d   :  { %741 = vrot.lane.b32.xlu2 %v1439_v34, %s1686_s3 }
 0xb34   :  { %v802_v36 = vpop.permute.xlu1 %801 }
 0xb35   :  { %v1994_v37 = vadd.f32 %v802_v36, %v794_v35 }
 0xb37   :  { %1440 = vtanh.f32 %v1994_v37 }
 0xb3d   :  { %v1441_v40 = vpop.eup %1440 }
 0xb3e   :  { %807 = vrot.lane.b32.xlu0 %v1441_v40, %s1686_s3 }
 0xb87   :  { %v742_v51 = vpop.permute.xlu2 %741 }
 0xb88   :  { %v744_v42 = vmul.f32 %v742_v51, %v725_v17 }
 0xb8a   :  { %814 = vrot.lane.b32.xlu1 %v744_v42, %s1687_s6 }
 0xbb0   :  { %v808_v54 = vpop.permute.xlu0 %807 }
 0xbb1   :  { %v1999_v41 = vmul.f32 %v808_v54, %v791_v29  ;;  %v942_v54 = vperm.slane %v1787_v15, 6 }
 0xbb3   :  { %878 = vrot.lane.b32.xlu2 %v1999_v41, %s1686_s3 }
 0xbfc   :  { %v815_v56 = vpop.permute.xlu1 %814 }
 0xbfd   :  { %1340 = vmatmul.msk.f32.vlgmr.msra.gmra.mxu3 %vm160_vm2, %v815_v56 }
 0xc0d   :  { %v879_v38 = vpop.permute.xlu2 %878 }
 0xc0e   :  { %v881_v57 = vsel %vm160_vm2, %v815_v56, %v879_v38  ;;  %v943_v56 = vadd.f32 %v942_v54, %v1793_v19 }
 0xc0f   :  { %1342 = vmatmul.msk.f32.vlgmr.msrb.gmra.mxu0 %vm357_vm7, %v881_v57 }
 0xc80   :  { %v835_v7 = vpop.f32.mrf.mxu3 }
 0xc81   :  { %v838_v53 = vadd.f32 %v835_v7, %v812_v58 }
 0xc83   :  { %1442 = vtanh.f32 %v838_v53  ;;  %v1341_v9 = vmul.f32 -1.442695, %v838_v53 }
 0xc89   :  { %v1443_v8 = vpop.eup %1442 }
 0xc8a   :  { %861 = vrot.lane.b32.xlu0 %v1443_v8, %s1686_s3 }
 0xc8c   :  { %v902_v43 = vpop.f32.mrf.mxu0 }
 0xc8d   :  { %v903_v44 = vadd.f32 %v1871_v59, %v902_v43 }
 0xc8f   :  { %1444 = vtanh.f32 %v903_v44  ;;  %v1343_v47 = vmul.f32 -1.442695, %v903_v44 }
 0xc90   :  { %1446 = vpow2.f32 %v1341_v9 }
 0xc91   :  { %1448 = vpow2.f32 %v1343_v47 }
 0xc95   :  { %v1445_v45 = vpop.eup %1444 }
 0xc96   :  { %927 = vrot.lane.b32.xlu1 %v1445_v45, %s1686_s3  ;;  %v1447_v46 = vpop.eup %1446 }
 0xc97   :  { %v842_v48 = vadd.f32 1.0, %v1447_v46  ;;  %v1449_v49 = vpop.eup %1448 }
 0xc98   :  { %v908_v60 = vadd.f32 1.0, %v1449_v49 }
 0xc99   :  { %1450 = vrcp.f32 %v842_v48  ;;  %v854_v3 = vand.u32 2147483648, %v842_v48  ;;  %vm848_vm13 = vweird.f32 %v842_v48  ;;  %v852_v4 = vand.u32 2147483647, %v842_v48 }
 0xc9a   :  { %1452 = vrcp.f32 %v908_v60  ;;  %v920_v18 = vand.u32 2147483648, %v908_v60  ;;  %vm914_vm1 = vweird.f32 %v908_v60  ;;  %v918_v20 = vand.u32 2147483647, %v908_v60 }
 0xc9b   :  { %v855_v11 = vor.u32 1.1754944e-38, %v854_v3  ;;  %vm853_vm15 = vcmp.eq.f32.partialorder %v852_v4, 8.507059e+37 }
 0xc9c   :  { %v921_v22 = vor.u32 1.1754944e-38, %v920_v18  ;;  %vm919_vm4 = vcmp.eq.f32.partialorder %v918_v20, 8.507059e+37 }
 0xc9f   :  { %v1451_v52 = vpop.eup %1450 }
 0xca0   :  { %v844_v61 = vmul.f32 %v1451_v52, %v842_v48  ;;  %v1453_v0 = vpop.eup %1452  ;;  %vm849_vm12 = vweird.f32 %v1451_v52 }
 0xca1   :  { %v910_v2 = vmul.f32 %v1453_v0, %v908_v60  ;;  %vm850_vm14 = vmor %vm848_vm13, %vm849_vm12  ;;  %vm915_vm0 = vweird.f32 %v1453_v0 }
 0xca2   :  { %v845_v62 = vsub.f32 1.0, %v844_v61  ;;  %vm916_vm3 = vmor %vm914_vm1, %vm915_vm0 }
 0xca3   :  { %v911_v10 = vsub.f32 1.0, %v910_v2 }
 0xca4   :  { %v846_v63 = vmul.f32 %v1451_v52, %v845_v62 }
 0xca5   :  { %v912_v16 = vmul.f32 %v1453_v0, %v911_v10 }
 0xca6   :  { %v847_v1 = vadd.f32 %v1451_v52, %v846_v63 }
 0xca7   :  { %v913_v17 = vadd.f32 %v1453_v0, %v912_v16 }
 0xca8   :  { %v851_v6 = vsel %vm850_vm14, %v1451_v52, %v847_v1 }
 0xca9   :  { %v856_v13 = vsel %vm853_vm15, %v855_v11, %v851_v6  ;;  %v917_v21 = vsel %vm916_vm3, %v1453_v0, %v913_v17 }
 0xcaa   :  { %v922_v24 = vsel %vm919_vm4, %v921_v22, %v917_v21  ;;  %v859_v26 = vmul.f32 %v856_v13, %v1989_v33 }
 0xcab   :  { %v925_v30 = vmul.f32 %v922_v24, %v1994_v37 }
 0xcfc   :  { %v862_v12 = vpop.permute.xlu0 %861 }
 0xcfd   :  { %v864_v14 = vmul.f32 %v862_v12, %v856_v13 }
 0xcff   :  { %866 = vrot.lane.b32.xlu2 %v864_v14, %s1687_s6 }
 0xd08   :  { %v928_v23 = vpop.permute.xlu1 %927 }
 0xd09   :  { %v930_v25 = vmul.f32 %v928_v23, %v922_v24 }
 0xd0b   :  { %932 = vrot.lane.b32.xlu0 %v930_v25, %s1687_s6 }
 0xd59   :  { %v867_v27 = vpop.permute.xlu2 %866 }
 0xd5a   :  { %v2014_v28 = vadd.f32 %v867_v27, %v859_v26 }
 0xd5c   :  { %1454 = vtanh.f32 %v2014_v28 }
 0xd62   :  { %v1455_v29 = vpop.eup %1454 }
 0xd63   :  { %872 = vrot.lane.b32.xlu1 %v1455_v29, %s1686_s3 }
 0xd7d   :  { %v933_v31 = vpop.permute.xlu0 %932 }
 0xd7e   :  { %v2019_v32 = vadd.f32 %v933_v31, %v925_v30 }
 0xd80   :  { %1456 = vtanh.f32 %v2019_v32 }
 0xd86   :  { %v1457_v34 = vpop.eup %1456 }
 0xd87   :  { %938 = vrot.lane.b32.xlu2 %v1457_v34, %s1686_s3 }
 0xdd5   :  { %v873_v35 = vpop.permute.xlu1 %872 }
 0xdd6   :  { %v875_v33 = vmul.f32 %v873_v35, %v856_v13 }
 0xdd8   :  { %945 = vrot.lane.b32.xlu0 %v875_v33, %s1687_s6 }
 0xde1   :  { %v939_v36 = vpop.permute.xlu2 %938 }
 0xde2   :  { %v2024_v40 = vmul.f32 %v939_v36, %v922_v24  ;;  %v1073_v36 = vperm.slane %v1787_v15, 7 }
 0xde4   :  { %1009 = vrot.lane.b32.xlu1 %v2024_v40, %s1686_s3 }
 0xe4a   :  { %v946_v51 = vpop.permute.xlu0 %945 }
 0xe4b   :  { %1344 = vmatmul.msk.f32.vlgmr.msrb.gmra.mxu2 %vm160_vm2, %v946_v51 }
 0xe56   :  { %v1010_v37 = vpop.permute.xlu1 %1009 }
 0xe57   :  { %v1012_v42 = vsel %vm160_vm2, %v946_v51, %v1010_v37  ;;  %v1074_v51 = vadd.f32 %v1073_v36, %v1793_v19 }
 0xe58   :  { %1346 = vmatmul.msk.f32.vlgmr.msrb.gmra.mxu3 %vm357_vm7, %v1012_v42 }
 0xece   :  { %v966_v38 = vpop.f32.mrf.mxu2 }
 0xecf   :  { %v969_v57 = vadd.f32 %v966_v38, %v943_v56  ;;  %v2062_v38 = vld [vmem:[%s2103_s8] ss:$0 sm:$0xff]  ;;  %s1688_s8 = smov 96  }
 0xed1   :  { %1458 = vtanh.f32 %v969_v57  ;;  %v1345_v8 = vmul.f32 -1.442695, %v969_v57 }
 0xed7   :  { %v1459_v39 = vpop.eup %1458 }
 0xed8   :  { %992 = vrot.lane.b32.xlu2 %v1459_v39, %s1686_s3 }
 0xedb   :  { %v1033_v58 = vpop.f32.mrf.mxu3 }
 0xedc   :  { %v1034_v7 = vadd.f32 %v1871_v59, %v1033_v58 }
 0xede   :  { %1460 = vtanh.f32 %v1034_v7  ;;  %v1347_v48 = vmul.f32 -1.442695, %v1034_v7 }
 0xedf   :  { %1462 = vpow2.f32 %v1345_v8 }
 0xee4   :  { %v1461_v53 = vpop.eup %1460 }
 0xee5   :  { %1058 = vrot.lane.b32.xlu0 %v1461_v53, %s1686_s3  ;;  %v1463_v43 = vpop.eup %1462 }
 0xee6   :  { %v973_v44 = vadd.f32 1.0, %v1463_v43 }
 0xee8   :  { %1464 = vrcp.f32 %v973_v44  ;;  %v985_v52 = vand.u32 2147483648, %v973_v44  ;;  %vm979_vm6 = vweird.f32 %v973_v44  ;;  %v983_v60 = vand.u32 2147483647, %v973_v44 }
 0xee9   :  { %1466 = vpow2.f32 %v1347_v48 }
 0xeea   :  { %v986_v61 = vor.u32 1.1754944e-38, %v985_v52  ;;  %vm984_vm9 = vcmp.eq.f32.partialorder %v983_v60, 8.507059e+37 }
 0xeee   :  { %v1465_v45 = vpop.eup %1464 }
 0xeef   :  { %v975_v9 = vmul.f32 %v1465_v45, %v973_v44  ;;  %vm980_vm5 = vweird.f32 %v1465_v45  ;;  %v1467_v1 = vpop.eup %1466 }
 0xef0   :  { %vm981_vm8 = vmor %vm979_vm6, %vm980_vm5  ;;  %v1039_v2 = vadd.f32 1.0, %v1467_v1 }
 0xef1   :  { %v976_v46 = vsub.f32 1.0, %v975_v9 }
 0xef2   :  { %1468 = vrcp.f32 %v1039_v2  ;;  %v1051_v12 = vand.u32 2147483648, %v1039_v2  ;;  %vm1045_vm11 = vweird.f32 %v1039_v2  ;;  %v1049_v13 = vand.u32 2147483647, %v1039_v2 }
 0xef3   :  { %v977_v47 = vmul.f32 %v1465_v45, %v976_v46 }
 0xef4   :  { %v1052_v16 = vor.u32 1.1754944e-38, %v1051_v12  ;;  %vm1050_vm13 = vcmp.eq.f32.partialorder %v1049_v13, 8.507059e+37 }
 0xef5   :  { %v978_v49 = vadd.f32 %v1465_v45, %v977_v47 }
 0xef7   :  { %v982_v59 = vsel %vm981_vm8, %v1465_v45, %v978_v49 }
 0xef8   :  { %v987_v62 = vsel %vm984_vm9, %v986_v61, %v982_v59  ;;  %v1469_v3 = vpop.eup %1468 }
 0xef9   :  { %v1041_v4 = vmul.f32 %v1469_v3, %v1039_v2  ;;  %vm1046_vm10 = vweird.f32 %v1469_v3  ;;  %v990_v21 = vmul.f32 %v987_v62, %v2014_v28 }
 0xefa   :  { %vm1047_vm12 = vmor %vm1045_vm11, %vm1046_vm10 }
 0xefb   :  { %v1042_v6 = vsub.f32 1.0, %v1041_v4 }
 0xefd   :  { %v1043_v10 = vmul.f32 %v1469_v3, %v1042_v6 }
 0xeff   :  { %v1044_v11 = vadd.f32 %v1469_v3, %v1043_v10 }
 0xf01   :  { %v1048_v14 = vsel %vm1047_vm12, %v1469_v3, %v1044_v11  ;;  %vm1287_vm12 = vcmask 785408  }
 0xf02   :  { %v1053_v18 = vsel %vm1050_vm13, %v1052_v16, %v1048_v14  ;;  %vm1295_vm13 = vcmask 1041408  }
 0xf03   :  { %v1056_v25 = vmul.f32 %v1053_v18, %v2019_v32 }
 0xf32   :  { %v993_v63 = vpop.permute.xlu2 %992 }
 0xf33   :  { %v995_v0 = vmul.f32 %v993_v63, %v987_v62 }
 0xf35   :  { %997 = vrot.lane.b32.xlu1 %v995_v0, %s1687_s6 }
 0xf57   :  { %v1059_v17 = vpop.permute.xlu0 %1058 }
 0xf58   :  { %v1061_v20 = vmul.f32 %v1059_v17, %v1053_v18 }
 0xf5a   :  { %1063 = vrot.lane.b32.xlu2 %v1061_v20, %s1687_s6 }
 0xfa7   :  { %v998_v22 = vpop.permute.xlu1 %997 }
 0xfa8   :  { %v2039_v23 = vadd.f32 %v998_v22, %v990_v21 }
 0xfaa   :  { %1470 = vtanh.f32 %v2039_v23 }
 0xfb0   :  { %v1471_v24 = vpop.eup %1470 }
 0xfb1   :  { %1003 = vrot.lane.b32.xlu0 %v1471_v24, %s1686_s3 }
 0xfb4   :  { %v1064_v26 = vpop.permute.xlu2 %1063 }
 0xfb5   :  { %v2044_v27 = vadd.f32 %v1064_v26, %v1056_v25 }
 0xfb7   :  { %1472 = vtanh.f32 %v2044_v27 }
 0xfbd   :  { %v1473_v29 = vpop.eup %1472 }
 0xfbe   :  { %1069 = vrot.lane.b32.xlu1 %v1473_v29, %s1686_s3 }
0x1023   :  { %v1004_v30 = vpop.permute.xlu0 %1003 }
0x1024   :  { %v1006_v28 = vmul.f32 %v1004_v30, %v987_v62 }
0x1026   :  { %1076 = vrot.lane.b32.xlu2 %v1006_v28, %s1687_s6 }
0x1030   :  { %v1070_v31 = vpop.permute.xlu1 %1069 }
0x1031   :  { %v1072_v34 = vmul.f32 %v1070_v31, %v1053_v18 }
0x1033   :  { %1140 = vrot.lane.b32.xlu0 %v1072_v34, %s1686_s3 }
0x1080   :  { %v1077_v35 = vpop.permute.xlu2 %1076 }
0x1081   :  { %1348 = vmatmul.msk.f32.vlgmr.msra.gmra.mxu1 %vm160_vm2, %v1077_v35 }
0x10a5   :  { %v2051_v32 = vpop.permute.xlu0 %1140 }
0x10a6   :  { %v1143_v33 = vsel %vm160_vm2, %v1077_v35, %v2051_v32 }
0x10a7   :  { %1350 = vmatmul.msk.f32.vlgmr.msra.gmra.mxu2 %vm357_vm7, %v1143_v33 }
0x10fe   :  { %v1097_v37 = vpop.f32.mrf.mxu1 }
0x10ff   :  { %v1100_v42 = vadd.f32 %v1097_v37, %v1074_v51 }
0x1101   :  { %1474 = vtanh.f32 %v1100_v42  ;;  %v1349_v15 = vmul.f32 -1.442695, %v1100_v42 }
0x1107   :  { %v1475_v54 = vpop.eup %1474 }
0x1108   :  { %1123 = vrot.lane.b32.xlu1 %v1475_v54, %s1686_s3 }
0x112a   :  { %v1164_v56 = vpop.f32.mrf.mxu2 }
0x112b   :  { %v1165_v57 = vadd.f32 %v2062_v38, %v1164_v56 }
0x112d   :  { %1476 = vtanh.f32 %v1165_v57  ;;  %v1351_v7 = vmul.f32 -1.442695, %v1165_v57 }
0x112e   :  { %1478 = vpow2.f32 %v1349_v15 }
0x1133   :  { %v1477_v39 = vpop.eup %1476 }
0x1134   :  { %1189 = vrot.lane.b32.xlu2 %v1477_v39, %s1686_s3  ;;  %v1479_v19 = vpop.eup %1478 }
0x1135   :  { %v1104_v58 = vadd.f32 1.0, %v1479_v19 }
0x1137   :  { %1480 = vrcp.f32 %v1104_v58  ;;  %v1116_v47 = vand.u32 2147483648, %v1104_v58  ;;  %vm1110_vm15 = vweird.f32 %v1104_v58  ;;  %v1114_v48 = vand.u32 2147483647, %v1104_v58 }
0x1138   :  { %1482 = vpow2.f32 %v1351_v7 }
0x1139   :  { %v1117_v60 = vor.u32 1.1754944e-38, %v1116_v47  ;;  %vm1115_vm1 = vcmp.eq.f32.partialorder %v1114_v48, 8.507059e+37 }
0x113d   :  { %v1481_v53 = vpop.eup %1480 }
0x113e   :  { %v1106_v8 = vmul.f32 %v1481_v53, %v1104_v58  ;;  %v1483_v43 = vpop.eup %1482  ;;  %vm1111_vm14 = vweird.f32 %v1481_v53 }
0x113f   :  { %v1170_v45 = vadd.f32 1.0, %v1483_v43  ;;  %vm1112_vm0 = vmor %vm1110_vm15, %vm1111_vm14 }
0x1140   :  { %v1107_v44 = vsub.f32 1.0, %v1106_v8 }
0x1141   :  { %1484 = vrcp.f32 %v1170_v45  ;;  %v1182_v3 = vand.u32 2147483648, %v1170_v45  ;;  %vm1176_vm4 = vweird.f32 %v1170_v45  ;;  %v1180_v4 = vand.u32 2147483647, %v1170_v45 }
0x1142   :  { %v1108_v9 = vmul.f32 %v1481_v53, %v1107_v44 }
0x1143   :  { %v1183_v10 = vor.u32 1.1754944e-38, %v1182_v3  ;;  %vm1181_vm6 = vcmp.eq.f32.partialorder %v1180_v4, 8.507059e+37 }
0x1144   :  { %v1109_v46 = vadd.f32 %v1481_v53, %v1108_v9 }
0x1146   :  { %v1113_v49 = vsel %vm1112_vm0, %v1481_v53, %v1109_v46 }
0x1147   :  { %v1485_v52 = vpop.eup %1484  ;;  %v1118_v61 = vsel %vm1115_vm1, %v1117_v60, %v1113_v49 }
0x1148   :  { %v1172_v63 = vmul.f32 %v1485_v52, %v1170_v45  ;;  %vm1177_vm3 = vweird.f32 %v1485_v52  ;;  %v1121_v14 = vmul.f32 %v1118_v61, %v2039_v23 }
0x1149   :  { %vm1178_vm5 = vmor %vm1176_vm4, %vm1177_vm3 }
0x114a   :  { %v1173_v0 = vsub.f32 1.0, %v1172_v63 }
0x114c   :  { %v1174_v1 = vmul.f32 %v1485_v52, %v1173_v0 }
0x114e   :  { %v1175_v2 = vadd.f32 %v1485_v52, %v1174_v1 }
0x1150   :  { %v1179_v6 = vsel %vm1178_vm5, %v1485_v52, %v1175_v2 }
0x1151   :  { %v1184_v12 = vsel %vm1181_vm6, %v1183_v10, %v1179_v6 }
0x1152   :  { %v1187_v20 = vmul.f32 %v1184_v12, %v2044_v27 }
0x117a   :  { %v1124_v59 = vpop.permute.xlu1 %1123 }
0x117b   :  { %v1126_v62 = vmul.f32 %v1124_v59, %v1118_v61 }
0x117d   :  { %1128 = vrot.lane.b32.xlu0 %v1126_v62, %s1687_s6 }
0x118e   :  { %v1190_v11 = vpop.permute.xlu2 %1189 }
0x118f   :  { %v1192_v13 = vmul.f32 %v1190_v11, %v1184_v12 }
0x1191   :  { %1194 = vrot.lane.b32.xlu1 %v1192_v13, %s1687_s6 }
0x11ef   :  { %v1129_v16 = vpop.permute.xlu0 %1128 }
0x11f0   :  { %v1131_v17 = vadd.f32 %v1129_v16, %v1121_v14 }
0x11f2   :  { %1486 = vtanh.f32 %v1131_v17 }
0x11f8   :  { %v1487_v18 = vpop.eup %1486 }
0x11f9   :  { %1134 = vrot.lane.b32.xlu2 %v1487_v18, %s1686_s3 }
0x1203   :  { %v1195_v21 = vpop.permute.xlu1 %1194 }
0x1204   :  { %v1197_v22 = vadd.f32 %v1195_v21, %v1187_v20 }
0x1206   :  { %1488 = vtanh.f32 %v1197_v22 }
0x120c   :  { %v1489_v24 = vpop.eup %1488 }
0x120d   :  { %1200 = vrot.lane.b32.xlu0 %v1489_v24, %s1686_s3 }
0x1253   :  { %v1135_v25 = vpop.permute.xlu2 %1134 }
0x1254   :  { %v1137_v26 = vmul.f32 %v1135_v25, %v1118_v61 }
0x1256   :  { %1205 = vrot.lane.b32.xlu1 %v1137_v26, %s1687_s6 }
0x127f   :  { %v1201_v29 = vpop.permute.xlu0 %1200 }
0x1280   :  { %v1203_v23 = vmul.f32 %v1201_v29, %v1184_v12 }
0x1282   :  { %1209 = vrot.lane.b32.xlu2 %v1203_v23, %s1686_s3 }
0x12c8   :  { %v1206_v30 = vpop.permute.xlu1 %1205 }
0x12dc   :  { %v1210_v28 = vpop.permute.xlu2 %1209 }
0x12dd   :  { %v1212_v31 = vsel %vm160_vm2, %v1206_v30, %v1210_v28 }
0x12de   :  { %1352 = vmatmul.msk.f32.vlgmr.msra.gmra.mxu0 %vm357_vm7, %v1212_v31 }
0x135b   :  { %v1233_v27 = vpop.f32.mrf.mxu0 }
0x135c   :  { %v1234_v34 = vadd.f32 %v2062_v38, %v1233_v27 }
0x135e   :  { %1490 = vtanh.f32 %v1234_v34  ;;  %v1353_v33 = vmul.f32 -1.442695, %v1234_v34 }
0x1360   :  { %1492 = vpow2.f32 %v1353_v33 }
0x1364   :  { %v1491_v35 = vpop.eup %1490 }
0x1365   :  { %1258 = vrot.lane.b32.xlu0 %v1491_v35, %s1686_s3 }
0x1366   :  { %v1493_v36 = vpop.eup %1492 }
0x1367   :  { %v1239_v51 = vadd.f32 1.0, %v1493_v36 }
0x1369   :  { %1494 = vrcp.f32 %v1239_v51  ;;  %v1251_v57 = vand.u32 2147483648, %v1239_v51  ;;  %vm1245_vm9 = vweird.f32 %v1239_v51  ;;  %v1249_v39 = vand.u32 2147483647, %v1239_v51 }
0x136b   :  { %vm1250_vm11 = vcmp.eq.f32.partialorder %v1249_v39, 8.507059e+37 }
0x136d   :  { %1279 = vrot.lane.b32.xlu0 %v2024_v40, %s1687_s6  ;;  %v1252_v40 = vor.u32 1.1754944e-38, %v1251_v57 }
0x136f   :  { %v1495_v37 = vpop.eup %1494 }
0x1370   :  { %v1241_v42 = vmul.f32 %v1495_v37, %v1239_v51  ;;  %vm1246_vm8 = vweird.f32 %v1495_v37 }
0x1371   :  { %vm1247_vm10 = vmor %vm1245_vm9, %vm1246_vm8 }
0x1372   :  { %v1242_v54 = vsub.f32 1.0, %v1241_v42 }
0x1374   :  { %v1243_v56 = vmul.f32 %v1495_v37, %v1242_v54 }
0x1375   :  { %1276 = vrot.lane.b32.xlu0 %v1966_v5, %s1688_s8 }
0x1376   :  { %v1244_v38 = vadd.f32 %v1495_v37, %v1243_v56 }
0x1378   :  { %v1248_v15 = vsel %vm1247_vm10, %v1495_v37, %v1244_v38 }
0x1379   :  { %v1253_v5 = vsel %vm1250_vm11, %v1252_v40, %v1248_v15 }
0x137a   :  { %v1256_v7 = vmul.f32 %v1253_v5, %v1197_v22 }
0x13d7   :  { %v1259_v19 = vpop.permute.xlu0 %1258 }
0x13d8   :  { %v1261_v58 = vmul.f32 %v1259_v19, %v1253_v5 }
0x13da   :  { %1263 = vrot.lane.b32.xlu1 %v1261_v58, %s1687_s6 }
0x13df   :  { %v1280_v44 = vpop.permute.xlu0 %1279 }
0x13e0   :  { %v1289_v47 = vsel %vm160_vm2, %v1280_v44, %v2051_v32 }
0x13e2   :  { %1282 = vrot.lane.b32.xlu1 %v1203_v23, %s1688_s8 }
0x13e7   :  { %v1277_v60 = vpop.permute.xlu0 %1276 }
0x144c   :  { %v1264_v53 = vpop.permute.xlu1 %1263 }
0x144d   :  { %v1266_v8 = vadd.f32 %v1264_v53, %v1256_v7 }
0x144f   :  { %1496 = vtanh.f32 %v1266_v8 }
0x1454   :  { %v1283_v9 = vpop.permute.xlu1 %1282 }
0x1455   :  { %v1497_v43 = vpop.eup %1496  ;;  %v1290_v48 = vsel %vm357_vm7, %v1289_v47, %v1283_v9 }
0x1456   :  { %1269 = vrot.lane.b32.xlu2 %v1497_v43, %s1686_s3 }
0x145e   :  { %1273 = vrot.lane.b32.xlu2 %v1888_v55, %s1687_s6 }
0x14b0   :  { %v1270_v45 = vpop.permute.xlu2 %1269 }
0x14b1   :  { %v1272_v46 = vmul.f32 %v1270_v45, %v1253_v5 }
0x14b3   :  { %v1291_v49 = vsel %vm1287_vm12, %v1290_v48, %v1272_v46 }
0x14b4   :  { %v1294_v59 = vrot.slane %v1291_v49, 6 }
0x14b8   :  { %v1274_v52 = vpop.permute.xlu2 %1273 }
0x14b9   :  { %v1285_v55 = vsel %vm160_vm2, %v1274_v52, %v1931_v50 }
0x14ba   :  { %v1286_v61 = vsel %vm357_vm7, %v1285_v55, %v1277_v60 }
0x14bb   :  { %v1288_v32 = vsel %vm1287_vm12, %v1286_v61, %v1999_v41 }
0x14bc   :  { %v1296_v62 = vsel %vm1295_vm13, %v1288_v32, %v1294_v59 }
0x14bd   :  { %1298 = vst [vmem:[#allocation13] sm:$0xf] %v1296_v62 }
0x14be   :  { %1309 = dma.vmem_to_hbm [thread:$0]  %s1305_s1, 64, %s1307_s25, [#allocation4]  }
0x14bf   :  { %1675 = dma.done.wait [#allocation4], 64  }
0x14c0   :  { %1676 = vsyncadd [#allocation4], 4294967232 }
0x14c1   :  { %1314 = vsyncpa [#allocation3], 1 }
0x14c2   :  { %1315 = vsyncpa [#allocation6], 1 }
0x14c3   :  { %1316 = vsyncpa [#allocation9], 1 }
0x14c4   :  { %1317 = vsyncpa [#allocation12], 1 }
0x14c5   :  { %1318 = vsyncpa [#allocation4], 1 }

</bundles_post_ra>
